<compile_context>
chip_gen: v7x
topology: tpu7x:2x2x1
jax: 0.10.0
libtpu: 0.0.40
codegen_flags: <defaults>
</compile_context>

<pallas_src>
import jax
import jax.numpy as jnp
from jax.experimental import pallas as pl
from jax.experimental.pallas import tpu as pltpu

LANE = 128


def _round_up(v, m):
    return (v + m - 1) // m * m


# ---------------------------------------------------------------------------
# in-kernel helpers (operate on f32 values)
# ---------------------------------------------------------------------------
def _bn_train(y, gamma, beta, eps=1e-5):
    """Training-mode BatchNorm over the row (batch*spatial) axis, single pass."""
    m = y.shape[0]
    s1 = jnp.sum(y, axis=0, keepdims=True)
    s2 = jnp.sum(y * y, axis=0, keepdims=True)
    mean = s1 * (1.0 / m)
    var = jnp.maximum(s2 * (1.0 / m) - mean * mean, 0.0)      # biased variance
    scale = gamma * jax.lax.rsqrt(var + eps)
    shift = beta - mean * scale
    return y * scale + shift


def _leaky_relu(y, slope):
    return jnp.where(y > 0, y, slope * y)


# ---------------------------------------------------------------------------
# fused 3-layer discriminator kernel (everything lives in values / vregs)
# ---------------------------------------------------------------------------
def _make_fused_kernel(cfg):
    N = cfg["N"]
    HB, WB = cfg["HB"], cfg["WB"]          # layer-1 output half-extents
    Ho2, Wo2 = cfg["Ho2"], cfg["Wo2"]      # layer-2 output extents (== HB, WB)
    k = cfg["k"]                           # layer-2 kernel size (4)
    C1p, C2p = cfg["C1p"], cfg["C2p"]      # lane-padded channel counts
    use_bn = cfg["use_bn"]
    slope = cfg["slope"]

    def kernel(p1_ref, w1_ref, w2_ref, w3_ref,
               g1_ref, b1_ref, g2_ref, b2_ref, out_ref):
        # ---- layer 1: conv (im2col matmul on MXU) + BN + LeakyReLU ----------
        y1 = jnp.dot(p1_ref[...], w1_ref[...],
                     preferred_element_type=jnp.float32)          # [M1, C1p]
        if use_bn:
            y1 = _bn_train(y1, g1_ref[...], b1_ref[...])
        y1 = _leaky_relu(y1, slope)

        # ---- layer 2: tap-accumulate conv (no im2col scratch, no stores) ----
        # y1 rows are ordered (parity_h, parity_w, i, j, n) by the wrapper, so
        # for a tap (ki,kj) and output row ho the needed [Wo2*N, C1p] slab is a
        # contiguous run of y1 rows; conv-padding positions become zero rows.
        M2 = N * Ho2 * Wo2
        y2 = jnp.zeros((M2, C2p), jnp.float32)
        for ki in range(k):
            ph = (ki - 1) % 2              # parity of the needed layer-1 row
            dh = (ki - 1 - ph) // 2        # i = ho + dh
            for kj in range(k):
                pw = (kj - 1) % 2
                dw = (kj - 1 - pw) // 2    # j = wo + dw
                wo_lo = max(0, -dw)
                wo_hi = min(Wo2, WB - dw)
                chunks = []
                for ho in range(Ho2):
                    i = ho + dh
                    if i < 0 or i >= HB:   # h-halo: whole chunk is conv padding
                        chunks.append(jnp.zeros((Wo2 * N, C1p), jnp.float32))
                        continue
                    base = ((ph * 2 + pw) * HB + i) * (WB * N)
                    pieces = []
                    if wo_lo > 0:          # left w-halo
                        pieces.append(jnp.zeros((wo_lo * N, C1p), jnp.float32))
                    pieces.append(y1[base + (wo_lo + dw) * N:
                                     base + (wo_hi + dw) * N, :])
                    if wo_hi < Wo2:        # right w-halo
                        pieces.append(jnp.zeros(((Wo2 - wo_hi) * N, C1p),
                                                jnp.float32))
                    chunks.append(pieces[0] if len(pieces) == 1
                                  else jnp.concatenate(pieces, axis=0))
                a_t = chunks[0] if len(chunks) == 1 else \
                    jnp.concatenate(chunks, axis=0)               # [M2, C1p]
                t = ki * k + kj
                y2 = y2 + jnp.dot(a_t.astype(jnp.bfloat16),
                                  w2_ref[t * C1p:(t + 1) * C1p, :],
                                  preferred_element_type=jnp.float32)
        if use_bn:
            y2 = _bn_train(y2, g2_ref[...], b2_ref[...])
        y2 = _leaky_relu(y2, slope)

        # ---- layer 3: full-window conv (1x1 spatial output) + Sigmoid -------
        # rows (ho, wo, n) of y2 regroup per sample into one lane-dense row.
        p3 = jnp.concatenate(
            [y2[s * N:(s + 1) * N, :] for s in range(Ho2 * Wo2)], axis=1)
        y3 = jnp.dot(p3.astype(jnp.bfloat16), w3_ref[...],
                     preferred_element_type=jnp.float32)          # [N, C3p]
        out_ref[...] = 1.0 / (1.0 + jnp.exp(-y3))                 # exact sigmoid

    return kernel


def _fused_forward(p1, w1, w2, w3, g1, b1, g2, b2, cfg):
    N, C3p = cfg["N"], cfg["C3p"]

    def vmem_spec():
        return pl.BlockSpec(memory_space=pltpu.MemorySpace.VMEM)

    return pl.pallas_call(
        _make_fused_kernel(cfg),
        out_shape=jax.ShapeDtypeStruct((N, C3p), jnp.float32),
        in_specs=[vmem_spec() for _ in range(8)],
        out_specs=vmem_spec(),
        compiler_params=pltpu.CompilerParams(
            vmem_limit_bytes=32 * 1024 * 1024),
    )(p1, w1, w2, w3, g1, b1, g2, b2)


# ---------------------------------------------------------------------------
# host-side glue: layer-1 patch matrix + weight/param packing
# ---------------------------------------------------------------------------
def _im2col_parity(x_nhwc, k, stride, pad):
    """im2col for layer 1.  Rows ordered (parity_h, parity_w, i, j, n) so the
    kernel's layer-2 tap reads are contiguous slabs; K columns = (ki, kj, c)."""
    N, H, W, C = x_nhwc.shape
    Ho = (H + 2 * pad - k) // stride + 1
    Wo = (W + 2 * pad - k) // stride + 1
    xp = jnp.pad(x_nhwc, ((0, 0), (pad, pad), (pad, pad), (0, 0)))
    taps = []
    for ki in range(k):
        for kj in range(k):
            taps.append(xp[:, ki:ki + stride * Ho:stride,
                           kj:kj + stride * Wo:stride, :])
    cols = jnp.stack(taps, axis=3).reshape(N, Ho, Wo, k * k * C)
    HB, WB = Ho // 2, Wo // 2
    colsr = cols.reshape(N, HB, 2, WB, 2, k * k * C)   # (n, i, ph, j, pw, K)
    p1 = jnp.transpose(colsr, (2, 4, 1, 3, 0, 5)).reshape(
        4 * HB * WB * N, k * k * C)
    return p1, Ho, Wo


def _prep_w_dense(w, k_pad, c_pad):
    """[Cout,Cin,k,k] -> [k*k*Cin (padded), Cout (padded)] bf16, K=(ki,kj,c)."""
    cout, cin, k, _ = w.shape
    m = jnp.transpose(w, (2, 3, 1, 0)).reshape(k * k * cin, cout)
    m = jnp.pad(m, ((0, k_pad - k * k * cin), (0, c_pad - cout)))
    return m.astype(jnp.bfloat16)


def _prep_w_tapped(w, cin_pad, cout_pad):
    """[Cout,Cin,k,k] -> [k*k*cin_pad, cout_pad] bf16, K=(ki,kj, padded cin)."""
    cout, cin, k, _ = w.shape
    a = jnp.transpose(w, (2, 3, 1, 0))                 # [k, k, cin, cout]
    a = jnp.pad(a, ((0, 0), (0, 0), (0, cin_pad - cin), (0, cout_pad - cout)))
    return a.reshape(k * k * cin_pad, cout_pad).astype(jnp.bfloat16)


def _pad_vec(v, cp):
    return jnp.pad(v, (0, cp - v.shape[0])).reshape(1, cp).astype(jnp.float32)


# ---------------------------------------------------------------------------
# Discriminator (parameters initialised like PyTorch _init_weights:
# conv weight ~ N(0, 0.02); BN weight ~ N(0, 0.02); BN bias = 0).
# ---------------------------------------------------------------------------
class PallasDiscriminator:
    def __init__(self, channels, kernels, strides, paddings, batch_norm, key,
                 negative_slope=0.2):
        assert len(channels) == 4, "fused kernel is specialised to 3 conv layers"
        assert kernels[1] == kernels[2] == 4
        assert strides[1] == strides[2] == 2
        assert paddings[1] == paddings[2] == 1
        assert paddings[3] == 0

        self.channels = list(channels)
        self.kernels = list(kernels)
        self.strides = list(strides)
        self.paddings = list(paddings)
        self.batch_norm = batch_norm
        self.slope = negative_slope

        self.w_raw, self.gamma_raw, self.beta_raw = [], [], []
        for i in range(1, len(channels)):
            key, wk, gk = jax.random.split(key, 3)
            c_in, c_out, kk = channels[i - 1], channels[i], kernels[i]
            w = 0.02 * jax.random.normal(wk, (c_out, c_in, kk, kk), jnp.float32)
            self.w_raw.append(w)
            if batch_norm and i < len(channels) - 1:
                self.gamma_raw.append(
                    0.02 * jax.random.normal(gk, (c_out,), jnp.float32))
                self.beta_raw.append(jnp.zeros((c_out,), jnp.float32))
            else:
                self.gamma_raw.append(jnp.ones((c_out,), jnp.float32))
                self.beta_raw.append(jnp.zeros((c_out,), jnp.float32))

        # lane-padded channel sizes (all matmul outputs stay lane-dense)
        self.c1p = _round_up(channels[1], LANE)
        self.c2p = _round_up(channels[2], LANE)
        self.c3p = _round_up(channels[3], LANE)
        k1 = channels[0] * kernels[1] * kernels[1]
        self.k1p = _round_up(k1, LANE)

        self.w1 = _prep_w_dense(self.w_raw[0], self.k1p, self.c1p)
        self.w2 = _prep_w_tapped(self.w_raw[1], self.c1p, self.c2p)
        self.w3 = _prep_w_tapped(self.w_raw[2], self.c2p, self.c3p)
        self.g1 = _pad_vec(self.gamma_raw[0], self.c1p)
        self.b1 = _pad_vec(self.beta_raw[0], self.c1p)
        self.g2 = _pad_vec(self.gamma_raw[1], self.c2p)
        self.b2 = _pad_vec(self.beta_raw[1], self.c2p)

    def __call__(self, x):
        # x: [N, C, H, W] float32 (NCHW, like PyTorch)
        N, C, H, W = x.shape
        assert C == self.channels[0]
        x_nhwc = jnp.transpose(x, (0, 2, 3, 1))
        p1, ho1, wo1 = _im2col_parity(x_nhwc, self.kernels[1],
                                      self.strides[1], self.paddings[1])
        assert ho1 % 2 == 0 and wo1 % 2 == 0
        hb, wb = ho1 // 2, wo1 // 2
        ho2, wo2 = hb, wb                         # k=4, s=2, p=1 second layer
        k3 = self.kernels[3]
        assert k3 == ho2 == wo2, "last conv must cover the remaining extent"

        k1 = p1.shape[1]
        p1 = jnp.pad(p1, ((0, 0), (0, self.k1p - k1))).astype(jnp.bfloat16)

        cfg = dict(N=N, HB=hb, WB=wb, Ho2=ho2, Wo2=wo2, k=self.kernels[2],
                   C1p=self.c1p, C2p=self.c2p, C3p=self.c3p,
                   use_bn=self.batch_norm, slope=self.slope)

        out = _fused_forward(p1, self.w1, self.w2, self.w3,
                             self.g1, self.b1, self.g2, self.b2, cfg)
        # real output channels are the first channels[3] lanes; 1x1 spatial
        return out[:, :self.channels[3]].reshape(N, self.channels[3], 1, 1)


# ---------------------------------------------------------------------------
# pure-JAX f32 reference (matches the PyTorch module semantics)
# ---------------------------------------------------------------------------
def _reference_forward(x, disc):
    def conv(h, w, s, p):
        return jax.lax.conv_general_dilated(
            h, w, (s, s), [(p, p), (p, p)],
            dimension_numbers=("NCHW", "OIHW", "NCHW"))

    def bn(h, gamma, beta, eps=1e-5):
        mean = jnp.mean(h, axis=(0, 2, 3), keepdims=True)
        var = jnp.mean((h - mean) ** 2, axis=(0, 2, 3), keepdims=True)
        hn = (h - mean) * jax.lax.rsqrt(var + eps)
        return hn * gamma.reshape(1, -1, 1, 1) + beta.reshape(1, -1, 1, 1)

    h = x
    n_layers = len(disc.channels) - 1
    for li in range(n_layers):
        i = li + 1
        h = conv(h, disc.w_raw[li], disc.strides[i], disc.paddings[i])
        last = (i == n_layers)
        if disc.batch_norm and not last:
            h = bn(h, disc.gamma_raw[li], disc.beta_raw[li])
        if last:
            h = jax.nn.sigmoid(h)
        else:
            h = jnp.where(h > 0, h, disc.slope * h)
    return h


# ---------------------------------------------------------------------------
if __name__ == "__main__":
    # Small DCGAN-style config:
    #   input  [2, 4, 16, 16]
    #   conv(4->8,  k=4, s=2, p=1) + BN + LeakyReLU(0.2) -> [2, 8, 8, 8]
    #   conv(8->16, k=4, s=2, p=1) + BN + LeakyReLU(0.2) -> [2, 16, 4, 4]
    #   conv(16->1, k=4, s=1, p=0) + Sigmoid             -> [2, 1, 1, 1]
    channels = [4, 8, 16, 1]
    kernels = [0, 4, 4, 4]
    strides = [0, 2, 2, 1]
    paddings = [0, 1, 1, 0]

    key = jax.random.PRNGKey(0)
    key, xkey = jax.random.split(key)
    x = jax.random.normal(xkey, (2, 4, 16, 16), jnp.float32)

    disc = PallasDiscriminator(channels, kernels, strides, paddings,
                               batch_norm=True, key=key)

    y = disc(x)
    y = jax.block_until_ready(y)
    assert y.shape == (2, 1, 1, 1), y.shape
    assert bool(jnp.all(jnp.isfinite(y)))

    # correctness check against a pure-JAX f32 reference (bf16 MXU operands ->
    # loose tolerance)
    y_ref = _reference_forward(x, disc)
    err = float(jnp.max(jnp.abs(y - y_ref)))
    assert err < 5e-3, f"max |pallas - reference| = {err}"

    print("KERNEL_OK")
</pallas_src>

<mosaic_0001>
module attributes {stable_mosaic.version = 11 : i64} {
  func.func @kernel(%arg0: memref<128x128xbf16, #tpu.memory_space<vmem>>, %arg1: memref<128x128xbf16, #tpu.memory_space<vmem>>, %arg2: memref<2048x128xbf16, #tpu.memory_space<vmem>>, %arg3: memref<2048x128xbf16, #tpu.memory_space<vmem>>, %arg4: memref<1x128xf32, #tpu.memory_space<vmem>>, %arg5: memref<1x128xf32, #tpu.memory_space<vmem>>, %arg6: memref<1x128xf32, #tpu.memory_space<vmem>>, %arg7: memref<1x128xf32, #tpu.memory_space<vmem>>, %arg8: memref<2x128xf32, #tpu.memory_space<vmem>>) attributes {dimension_semantics = [], scalar_prefetch = 0 : i64, scratch_operands = 0 : i64, tpu.core_type = #tpu.core_type<tc>} {
    %c0 = arith.constant 0 : index
    %c0_0 = arith.constant 0 : index
    %0 = vector.load %arg0[%c0, %c0_0] : memref<128x128xbf16, #tpu.memory_space<vmem>>, vector<128x128xbf16>
    %c0_1 = arith.constant 0 : index
    %c0_2 = arith.constant 0 : index
    %1 = vector.load %arg1[%c0_1, %c0_2] : memref<128x128xbf16, #tpu.memory_space<vmem>>, vector<128x128xbf16>
    %cst = arith.constant dense<0.000000e+00> : vector<128x128xf32>
    %2 = tpu.matmul %0, %1, %cst {dimension_numbers = #tpu.dot_dimension_numbers<[1], [0], [0], [1], [0, 0, 1, 1], [], []>} : vector<128x128xbf16>, vector<128x128xbf16>, vector<128x128xf32> -> vector<128x128xf32>
    %c0_3 = arith.constant 0 : index
    %c0_4 = arith.constant 0 : index
    %3 = vector.load %arg4[%c0_3, %c0_4] : memref<1x128xf32, #tpu.memory_space<vmem>>, vector<1x128xf32>
    %c0_5 = arith.constant 0 : index
    %c0_6 = arith.constant 0 : index
    %4 = vector.load %arg5[%c0_5, %c0_6] : memref<1x128xf32, #tpu.memory_space<vmem>>, vector<1x128xf32>
    %cst_7 = arith.constant dense<0.000000e+00> : vector<128xf32>
    %5 = vector.multi_reduction <add>, %2, %cst_7 [0] : vector<128x128xf32> to vector<128xf32>
    %6 = vector.shape_cast %5 : vector<128xf32> to vector<1x128xf32>
    %7 = arith.mulf %2, %2 : vector<128x128xf32>
    %cst_8 = arith.constant dense<0.000000e+00> : vector<128xf32>
    %8 = vector.multi_reduction <add>, %7, %cst_8 [0] : vector<128x128xf32> to vector<128xf32>
    %9 = vector.shape_cast %8 : vector<128xf32> to vector<1x128xf32>
    %cst_9 = arith.constant 7.812500e-03 : f32
    %10 = vector.broadcast %cst_9 : f32 to vector<1x128xf32>
    %11 = arith.mulf %6, %10 : vector<1x128xf32>
    %cst_10 = arith.constant 7.812500e-03 : f32
    %12 = vector.broadcast %cst_10 : f32 to vector<1x128xf32>
    %13 = arith.mulf %9, %12 : vector<1x128xf32>
    %14 = arith.mulf %11, %11 : vector<1x128xf32>
    %15 = arith.subf %13, %14 : vector<1x128xf32>
    %cst_11 = arith.constant 0.000000e+00 : f32
    %16 = vector.broadcast %cst_11 : f32 to vector<1x128xf32>
    %17 = arith.maximumf %15, %16 : vector<1x128xf32>
    %cst_12 = arith.constant 9.99999974E-6 : f32
    %18 = vector.broadcast %cst_12 : f32 to vector<1x128xf32>
    %19 = arith.addf %17, %18 : vector<1x128xf32>
    %20 = math.rsqrt %19 : vector<1x128xf32>
    %21 = arith.mulf %3, %20 : vector<1x128xf32>
    %22 = arith.mulf %11, %21 : vector<1x128xf32>
    %23 = arith.subf %4, %22 : vector<1x128xf32>
    %24 = vector.broadcast %21 : vector<1x128xf32> to vector<128x128xf32>
    %25 = arith.mulf %2, %24 : vector<128x128xf32>
    %26 = vector.broadcast %23 : vector<1x128xf32> to vector<128x128xf32>
    %27 = arith.addf %25, %26 : vector<128x128xf32>
    %cst_13 = arith.constant 0.000000e+00 : f32
    %28 = vector.broadcast %cst_13 : f32 to vector<128x128xf32>
    %29 = arith.cmpf ogt, %27, %28 : vector<128x128xf32>
    %cst_14 = arith.constant 2.000000e-01 : f32
    %30 = vector.broadcast %cst_14 : f32 to vector<128x128xf32>
    %31 = arith.mulf %30, %27 : vector<128x128xf32>
    %32 = arith.select %29, %27, %31 : vector<128x128xi1>, vector<128x128xf32>
    %cst_15 = arith.constant 0.000000e+00 : f32
    %33 = vector.broadcast %cst_15 : f32 to vector<32x128xf32>
    %cst_16 = arith.constant 0.000000e+00 : f32
    %34 = vector.broadcast %cst_16 : f32 to vector<8x128xf32>
    %cst_17 = arith.constant 0.000000e+00 : f32
    %35 = vector.broadcast %cst_17 : f32 to vector<2x128xf32>
    %36 = vector.extract_strided_slice %32 {offsets = [96, 0], sizes = [6, 128], strides = [1, 1]} : vector<128x128xf32> to vector<6x128xf32>
    %37 = tpu.concatenate %35, %36 in 0 : vector<2x128xf32>, vector<6x128xf32> -> vector<8x128xf32>
    %cst_18 = arith.constant 0.000000e+00 : f32
    %38 = vector.broadcast %cst_18 : f32 to vector<2x128xf32>
    %39 = vector.extract_strided_slice %32 {offsets = [104, 0], sizes = [6, 128], strides = [1, 1]} : vector<128x128xf32> to vector<6x128xf32>
    %40 = tpu.concatenate %38, %39 in 0 : vector<2x128xf32>, vector<6x128xf32> -> vector<8x128xf32>
    %cst_19 = arith.constant 0.000000e+00 : f32
    %41 = vector.broadcast %cst_19 : f32 to vector<2x128xf32>
    %42 = vector.extract_strided_slice %32 {offsets = [112, 0], sizes = [6, 128], strides = [1, 1]} : vector<128x128xf32> to vector<6x128xf32>
    %43 = tpu.concatenate %41, %42 in 0 : vector<2x128xf32>, vector<6x128xf32> -> vector<8x128xf32>
    %44 = tpu.concatenate %34, %37, %40, %43 in 0 : vector<8x128xf32>, vector<8x128xf32>, vector<8x128xf32>, vector<8x128xf32> -> vector<32x128xf32>
    %45 = arith.truncf %44 : vector<32x128xf32> to vector<32x128xbf16>
    %c0_20 = arith.constant 0 : index
    %c0_21 = arith.constant 0 : index
    %46 = vector.load %arg2[%c0_20, %c0_21] : memref<2048x128xbf16, #tpu.memory_space<vmem>>, vector<128x128xbf16>
    %cst_22 = arith.constant dense<0.000000e+00> : vector<32x128xf32>
    %47 = tpu.matmul %45, %46, %cst_22 {dimension_numbers = #tpu.dot_dimension_numbers<[1], [0], [0], [1], [0, 0, 1, 1], [], []>} : vector<32x128xbf16>, vector<128x128xbf16>, vector<32x128xf32> -> vector<32x128xf32>
    %48 = arith.addf %33, %47 : vector<32x128xf32>
    %cst_23 = arith.constant 0.000000e+00 : f32
    %49 = vector.broadcast %cst_23 : f32 to vector<8x128xf32>
    %50 = vector.extract_strided_slice %32 {offsets = [64, 0], sizes = [8, 128], strides = [1, 1]} : vector<128x128xf32> to vector<8x128xf32>
    %51 = vector.extract_strided_slice %32 {offsets = [72, 0], sizes = [8, 128], strides = [1, 1]} : vector<128x128xf32> to vector<8x128xf32>
    %52 = vector.extract_strided_slice %32 {offsets = [80, 0], sizes = [8, 128], strides = [1, 1]} : vector<128x128xf32> to vector<8x128xf32>
    %53 = tpu.concatenate %49, %50, %51, %52 in 0 : vector<8x128xf32>, vector<8x128xf32>, vector<8x128xf32>, vector<8x128xf32> -> vector<32x128xf32>
    %54 = arith.truncf %53 : vector<32x128xf32> to vector<32x128xbf16>
    %c128 = arith.constant 128 : index
    %c0_24 = arith.constant 0 : index
    %55 = vector.load %arg2[%c128, %c0_24] : memref<2048x128xbf16, #tpu.memory_space<vmem>>, vector<128x128xbf16>
    %cst_25 = arith.constant dense<0.000000e+00> : vector<32x128xf32>
    %56 = tpu.matmul %54, %55, %cst_25 {dimension_numbers = #tpu.dot_dimension_numbers<[1], [0], [0], [1], [0, 0, 1, 1], [], []>} : vector<32x128xbf16>, vector<128x128xbf16>, vector<32x128xf32> -> vector<32x128xf32>
    %57 = arith.addf %48, %56 : vector<32x128xf32>
    %cst_26 = arith.constant 0.000000e+00 : f32
    %58 = vector.broadcast %cst_26 : f32 to vector<8x128xf32>
    %59 = vector.extract_strided_slice %32 {offsets = [96, 0], sizes = [8, 128], strides = [1, 1]} : vector<128x128xf32> to vector<8x128xf32>
    %60 = vector.extract_strided_slice %32 {offsets = [104, 0], sizes = [8, 128], strides = [1, 1]} : vector<128x128xf32> to vector<8x128xf32>
    %61 = vector.extract_strided_slice %32 {offsets = [112, 0], sizes = [8, 128], strides = [1, 1]} : vector<128x128xf32> to vector<8x128xf32>
    %62 = tpu.concatenate %58, %59, %60, %61 in 0 : vector<8x128xf32>, vector<8x128xf32>, vector<8x128xf32>, vector<8x128xf32> -> vector<32x128xf32>
    %63 = arith.truncf %62 : vector<32x128xf32> to vector<32x128xbf16>
    %c256 = arith.constant 256 : index
    %c0_27 = arith.constant 0 : index
    %64 = vector.load %arg2[%c256, %c0_27] : memref<2048x128xbf16, #tpu.memory_space<vmem>>, vector<128x128xbf16>
    %cst_28 = arith.constant dense<0.000000e+00> : vector<32x128xf32>
    %65 = tpu.matmul %63, %64, %cst_28 {dimension_numbers = #tpu.dot_dimension_numbers<[1], [0], [0], [1], [0, 0, 1, 1], [], []>} : vector<32x128xbf16>, vector<128x128xbf16>, vector<32x128xf32> -> vector<32x128xf32>
    %66 = arith.addf %57, %65 : vector<32x128xf32>
    %cst_29 = arith.constant 0.000000e+00 : f32
    %67 = vector.broadcast %cst_29 : f32 to vector<8x128xf32>
    %68 = vector.extract_strided_slice %32 {offsets = [66, 0], sizes = [6, 128], strides = [1, 1]} : vector<128x128xf32> to vector<6x128xf32>
    %cst_30 = arith.constant 0.000000e+00 : f32
    %69 = vector.broadcast %cst_30 : f32 to vector<2x128xf32>
    %70 = tpu.concatenate %68, %69 in 0 : vector<6x128xf32>, vector<2x128xf32> -> vector<8x128xf32>
    %71 = vector.extract_strided_slice %32 {offsets = [74, 0], sizes = [6, 128], strides = [1, 1]} : vector<128x128xf32> to vector<6x128xf32>
    %cst_31 = arith.constant 0.000000e+00 : f32
    %72 = vector.broadcast %cst_31 : f32 to vector<2x128xf32>
    %73 = tpu.concatenate %71, %72 in 0 : vector<6x128xf32>, vector<2x128xf32> -> vector<8x128xf32>
    %74 = vector.extract_strided_slice %32 {offsets = [82, 0], sizes = [6, 128], strides = [1, 1]} : vector<128x128xf32> to vector<6x128xf32>
    %cst_32 = arith.constant 0.000000e+00 : f32
    %75 = vector.broadcast %cst_32 : f32 to vector<2x128xf32>
    %76 = tpu.concatenate %74, %75 in 0 : vector<6x128xf32>, vector<2x128xf32> -> vector<8x128xf32>
    %77 = tpu.concatenate %67, %70, %73, %76 in 0 : vector<8x128xf32>, vector<8x128xf32>, vector<8x128xf32>, vector<8x128xf32> -> vector<32x128xf32>
    %78 = arith.truncf %77 : vector<32x128xf32> to vector<32x128xbf16>
    %c384 = arith.constant 384 : index
    %c0_33 = arith.constant 0 : index
    %79 = vector.load %arg2[%c384, %c0_33] : memref<2048x128xbf16, #tpu.memory_space<vmem>>, vector<128x128xbf16>
    %cst_34 = arith.constant dense<0.000000e+00> : vector<32x128xf32>
    %80 = tpu.matmul %78, %79, %cst_34 {dimension_numbers = #tpu.dot_dimension_numbers<[1], [0], [0], [1], [0, 0, 1, 1], [], []>} : vector<32x128xbf16>, vector<128x128xbf16>, vector<32x128xf32> -> vector<32x128xf32>
    %81 = arith.addf %66, %80 : vector<32x128xf32>
    %cst_35 = arith.constant 0.000000e+00 : f32
    %82 = vector.broadcast %cst_35 : f32 to vector<2x128xf32>
    %83 = vector.extract_strided_slice %32 {offsets = [32, 0], sizes = [6, 128], strides = [1, 1]} : vector<128x128xf32> to vector<6x128xf32>
    %84 = tpu.concatenate %82, %83 in 0 : vector<2x128xf32>, vector<6x128xf32> -> vector<8x128xf32>
    %cst_36 = arith.constant 0.000000e+00 : f32
    %85 = vector.broadcast %cst_36 : f32 to vector<2x128xf32>
    %86 = vector.extract_strided_slice %32 {offsets = [40, 0], sizes = [6, 128], strides = [1, 1]} : vector<128x128xf32> to vector<6x128xf32>
    %87 = tpu.concatenate %85, %86 in 0 : vector<2x128xf32>, vector<6x128xf32> -> vector<8x128xf32>
    %cst_37 = arith.constant 0.000000e+00 : f32
    %88 = vector.broadcast %cst_37 : f32 to vector<2x128xf32>
    %89 = vector.extract_strided_slice %32 {offsets = [48, 0], sizes = [6, 128], strides = [1, 1]} : vector<128x128xf32> to vector<6x128xf32>
    %90 = tpu.concatenate %88, %89 in 0 : vector<2x128xf32>, vector<6x128xf32> -> vector<8x128xf32>
    %cst_38 = arith.constant 0.000000e+00 : f32
    %91 = vector.broadcast %cst_38 : f32 to vector<2x128xf32>
    %92 = vector.extract_strided_slice %32 {offsets = [56, 0], sizes = [6, 128], strides = [1, 1]} : vector<128x128xf32> to vector<6x128xf32>
    %93 = tpu.concatenate %91, %92 in 0 : vector<2x128xf32>, vector<6x128xf32> -> vector<8x128xf32>
    %94 = tpu.concatenate %84, %87, %90, %93 in 0 : vector<8x128xf32>, vector<8x128xf32>, vector<8x128xf32>, vector<8x128xf32> -> vector<32x128xf32>
    %95 = arith.truncf %94 : vector<32x128xf32> to vector<32x128xbf16>
    %c512 = arith.constant 512 : index
    %c0_39 = arith.constant 0 : index
    %96 = vector.load %arg2[%c512, %c0_39] : memref<2048x128xbf16, #tpu.memory_space<vmem>>, vector<128x128xbf16>
    %cst_40 = arith.constant dense<0.000000e+00> : vector<32x128xf32>
    %97 = tpu.matmul %95, %96, %cst_40 {dimension_numbers = #tpu.dot_dimension_numbers<[1], [0], [0], [1], [0, 0, 1, 1], [], []>} : vector<32x128xbf16>, vector<128x128xbf16>, vector<32x128xf32> -> vector<32x128xf32>
    %98 = arith.addf %81, %97 : vector<32x128xf32>
    %99 = vector.extract_strided_slice %32 {offsets = [0, 0], sizes = [8, 128], strides = [1, 1]} : vector<128x128xf32> to vector<8x128xf32>
    %100 = vector.extract_strided_slice %32 {offsets = [8, 0], sizes = [8, 128], strides = [1, 1]} : vector<128x128xf32> to vector<8x128xf32>
    %101 = vector.extract_strided_slice %32 {offsets = [16, 0], sizes = [8, 128], strides = [1, 1]} : vector<128x128xf32> to vector<8x128xf32>
    %102 = vector.extract_strided_slice %32 {offsets = [24, 0], sizes = [8, 128], strides = [1, 1]} : vector<128x128xf32> to vector<8x128xf32>
    %103 = tpu.concatenate %99, %100, %101, %102 in 0 : vector<8x128xf32>, vector<8x128xf32>, vector<8x128xf32>, vector<8x128xf32> -> vector<32x128xf32>
    %104 = arith.truncf %103 : vector<32x128xf32> to vector<32x128xbf16>
    %c640 = arith.constant 640 : index
    %c0_41 = arith.constant 0 : index
    %105 = vector.load %arg2[%c640, %c0_41] : memref<2048x128xbf16, #tpu.memory_space<vmem>>, vector<128x128xbf16>
    %cst_42 = arith.constant dense<0.000000e+00> : vector<32x128xf32>
    %106 = tpu.matmul %104, %105, %cst_42 {dimension_numbers = #tpu.dot_dimension_numbers<[1], [0], [0], [1], [0, 0, 1, 1], [], []>} : vector<32x128xbf16>, vector<128x128xbf16>, vector<32x128xf32> -> vector<32x128xf32>
    %107 = arith.addf %98, %106 : vector<32x128xf32>
    %108 = vector.extract_strided_slice %32 {offsets = [32, 0], sizes = [8, 128], strides = [1, 1]} : vector<128x128xf32> to vector<8x128xf32>
    %109 = vector.extract_strided_slice %32 {offsets = [40, 0], sizes = [8, 128], strides = [1, 1]} : vector<128x128xf32> to vector<8x128xf32>
    %110 = vector.extract_strided_slice %32 {offsets = [48, 0], sizes = [8, 128], strides = [1, 1]} : vector<128x128xf32> to vector<8x128xf32>
    %111 = vector.extract_strided_slice %32 {offsets = [56, 0], sizes = [8, 128], strides = [1, 1]} : vector<128x128xf32> to vector<8x128xf32>
    %112 = tpu.concatenate %108, %109, %110, %111 in 0 : vector<8x128xf32>, vector<8x128xf32>, vector<8x128xf32>, vector<8x128xf32> -> vector<32x128xf32>
    %113 = arith.truncf %112 : vector<32x128xf32> to vector<32x128xbf16>
    %c768 = arith.constant 768 : index
    %c0_43 = arith.constant 0 : index
    %114 = vector.load %arg2[%c768, %c0_43] : memref<2048x128xbf16, #tpu.memory_space<vmem>>, vector<128x128xbf16>
    %cst_44 = arith.constant dense<0.000000e+00> : vector<32x128xf32>
    %115 = tpu.matmul %113, %114, %cst_44 {dimension_numbers = #tpu.dot_dimension_numbers<[1], [0], [0], [1], [0, 0, 1, 1], [], []>} : vector<32x128xbf16>, vector<128x128xbf16>, vector<32x128xf32> -> vector<32x128xf32>
    %116 = arith.addf %107, %115 : vector<32x128xf32>
    %117 = vector.extract_strided_slice %32 {offsets = [2, 0], sizes = [6, 128], strides = [1, 1]} : vector<128x128xf32> to vector<6x128xf32>
    %cst_45 = arith.constant 0.000000e+00 : f32
    %118 = vector.broadcast %cst_45 : f32 to vector<2x128xf32>
    %119 = tpu.concatenate %117, %118 in 0 : vector<6x128xf32>, vector<2x128xf32> -> vector<8x128xf32>
    %120 = vector.extract_strided_slice %32 {offsets = [10, 0], sizes = [6, 128], strides = [1, 1]} : vector<128x128xf32> to vector<6x128xf32>
    %cst_46 = arith.constant 0.000000e+00 : f32
    %121 = vector.broadcast %cst_46 : f32 to vector<2x128xf32>
    %122 = tpu.concatenate %120, %121 in 0 : vector<6x128xf32>, vector<2x128xf32> -> vector<8x128xf32>
    %123 = vector.extract_strided_slice %32 {offsets = [18, 0], sizes = [6, 128], strides = [1, 1]} : vector<128x128xf32> to vector<6x128xf32>
    %cst_47 = arith.constant 0.000000e+00 : f32
    %124 = vector.broadcast %cst_47 : f32 to vector<2x128xf32>
    %125 = tpu.concatenate %123, %124 in 0 : vector<6x128xf32>, vector<2x128xf32> -> vector<8x128xf32>
    %126 = vector.extract_strided_slice %32 {offsets = [26, 0], sizes = [6, 128], strides = [1, 1]} : vector<128x128xf32> to vector<6x128xf32>
    %cst_48 = arith.constant 0.000000e+00 : f32
    %127 = vector.broadcast %cst_48 : f32 to vector<2x128xf32>
    %128 = tpu.concatenate %126, %127 in 0 : vector<6x128xf32>, vector<2x128xf32> -> vector<8x128xf32>
    %129 = tpu.concatenate %119, %122, %125, %128 in 0 : vector<8x128xf32>, vector<8x128xf32>, vector<8x128xf32>, vector<8x128xf32> -> vector<32x128xf32>
    %130 = arith.truncf %129 : vector<32x128xf32> to vector<32x128xbf16>
    %c896 = arith.constant 896 : index
    %c0_49 = arith.constant 0 : index
    %131 = vector.load %arg2[%c896, %c0_49] : memref<2048x128xbf16, #tpu.memory_space<vmem>>, vector<128x128xbf16>
    %cst_50 = arith.constant dense<0.000000e+00> : vector<32x128xf32>
    %132 = tpu.matmul %130, %131, %cst_50 {dimension_numbers = #tpu.dot_dimension_numbers<[1], [0], [0], [1], [0, 0, 1, 1], [], []>} : vector<32x128xbf16>, vector<128x128xbf16>, vector<32x128xf32> -> vector<32x128xf32>
    %133 = arith.addf %116, %132 : vector<32x128xf32>
    %cst_51 = arith.constant 0.000000e+00 : f32
    %134 = vector.broadcast %cst_51 : f32 to vector<2x128xf32>
    %135 = vector.extract_strided_slice %32 {offsets = [96, 0], sizes = [6, 128], strides = [1, 1]} : vector<128x128xf32> to vector<6x128xf32>
    %136 = tpu.concatenate %134, %135 in 0 : vector<2x128xf32>, vector<6x128xf32> -> vector<8x128xf32>
    %cst_52 = arith.constant 0.000000e+00 : f32
    %137 = vector.broadcast %cst_52 : f32 to vector<2x128xf32>
    %138 = vector.extract_strided_slice %32 {offsets = [104, 0], sizes = [6, 128], strides = [1, 1]} : vector<128x128xf32> to vector<6x128xf32>
    %139 = tpu.concatenate %137, %138 in 0 : vector<2x128xf32>, vector<6x128xf32> -> vector<8x128xf32>
    %cst_53 = arith.constant 0.000000e+00 : f32
    %140 = vector.broadcast %cst_53 : f32 to vector<2x128xf32>
    %141 = vector.extract_strided_slice %32 {offsets = [112, 0], sizes = [6, 128], strides = [1, 1]} : vector<128x128xf32> to vector<6x128xf32>
    %142 = tpu.concatenate %140, %141 in 0 : vector<2x128xf32>, vector<6x128xf32> -> vector<8x128xf32>
    %cst_54 = arith.constant 0.000000e+00 : f32
    %143 = vector.broadcast %cst_54 : f32 to vector<2x128xf32>
    %144 = vector.extract_strided_slice %32 {offsets = [120, 0], sizes = [6, 128], strides = [1, 1]} : vector<128x128xf32> to vector<6x128xf32>
    %145 = tpu.concatenate %143, %144 in 0 : vector<2x128xf32>, vector<6x128xf32> -> vector<8x128xf32>
    %146 = tpu.concatenate %136, %139, %142, %145 in 0 : vector<8x128xf32>, vector<8x128xf32>, vector<8x128xf32>, vector<8x128xf32> -> vector<32x128xf32>
    %147 = arith.truncf %146 : vector<32x128xf32> to vector<32x128xbf16>
    %c1024 = arith.constant 1024 : index
    %c0_55 = arith.constant 0 : index
    %148 = vector.load %arg2[%c1024, %c0_55] : memref<2048x128xbf16, #tpu.memory_space<vmem>>, vector<128x128xbf16>
    %cst_56 = arith.constant dense<0.000000e+00> : vector<32x128xf32>
    %149 = tpu.matmul %147, %148, %cst_56 {dimension_numbers = #tpu.dot_dimension_numbers<[1], [0], [0], [1], [0, 0, 1, 1], [], []>} : vector<32x128xbf16>, vector<128x128xbf16>, vector<32x128xf32> -> vector<32x128xf32>
    %150 = arith.addf %133, %149 : vector<32x128xf32>
    %151 = vector.extract_strided_slice %32 {offsets = [64, 0], sizes = [8, 128], strides = [1, 1]} : vector<128x128xf32> to vector<8x128xf32>
    %152 = vector.extract_strided_slice %32 {offsets = [72, 0], sizes = [8, 128], strides = [1, 1]} : vector<128x128xf32> to vector<8x128xf32>
    %153 = vector.extract_strided_slice %32 {offsets = [80, 0], sizes = [8, 128], strides = [1, 1]} : vector<128x128xf32> to vector<8x128xf32>
    %154 = vector.extract_strided_slice %32 {offsets = [88, 0], sizes = [8, 128], strides = [1, 1]} : vector<128x128xf32> to vector<8x128xf32>
    %155 = tpu.concatenate %151, %152, %153, %154 in 0 : vector<8x128xf32>, vector<8x128xf32>, vector<8x128xf32>, vector<8x128xf32> -> vector<32x128xf32>
    %156 = arith.truncf %155 : vector<32x128xf32> to vector<32x128xbf16>
    %c1152 = arith.constant 1152 : index
    %c0_57 = arith.constant 0 : index
    %157 = vector.load %arg2[%c1152, %c0_57] : memref<2048x128xbf16, #tpu.memory_space<vmem>>, vector<128x128xbf16>
    %cst_58 = arith.constant dense<0.000000e+00> : vector<32x128xf32>
    %158 = tpu.matmul %156, %157, %cst_58 {dimension_numbers = #tpu.dot_dimension_numbers<[1], [0], [0], [1], [0, 0, 1, 1], [], []>} : vector<32x128xbf16>, vector<128x128xbf16>, vector<32x128xf32> -> vector<32x128xf32>
    %159 = arith.addf %150, %158 : vector<32x128xf32>
    %160 = vector.extract_strided_slice %32 {offsets = [96, 0], sizes = [8, 128], strides = [1, 1]} : vector<128x128xf32> to vector<8x128xf32>
    %161 = vector.extract_strided_slice %32 {offsets = [104, 0], sizes = [8, 128], strides = [1, 1]} : vector<128x128xf32> to vector<8x128xf32>
    %162 = vector.extract_strided_slice %32 {offsets = [112, 0], sizes = [8, 128], strides = [1, 1]} : vector<128x128xf32> to vector<8x128xf32>
    %163 = vector.extract_strided_slice %32 {offsets = [120, 0], sizes = [8, 128], strides = [1, 1]} : vector<128x128xf32> to vector<8x128xf32>
    %164 = tpu.concatenate %160, %161, %162, %163 in 0 : vector<8x128xf32>, vector<8x128xf32>, vector<8x128xf32>, vector<8x128xf32> -> vector<32x128xf32>
    %165 = arith.truncf %164 : vector<32x128xf32> to vector<32x128xbf16>
    %c1280 = arith.constant 1280 : index
    %c0_59 = arith.constant 0 : index
    %166 = vector.load %arg2[%c1280, %c0_59] : memref<2048x128xbf16, #tpu.memory_space<vmem>>, vector<128x128xbf16>
    %cst_60 = arith.constant dense<0.000000e+00> : vector<32x128xf32>
    %167 = tpu.matmul %165, %166, %cst_60 {dimension_numbers = #tpu.dot_dimension_numbers<[1], [0], [0], [1], [0, 0, 1, 1], [], []>} : vector<32x128xbf16>, vector<128x128xbf16>, vector<32x128xf32> -> vector<32x128xf32>
    %168 = arith.addf %159, %167 : vector<32x128xf32>
    %169 = vector.extract_strided_slice %32 {offsets = [66, 0], sizes = [6, 128], strides = [1, 1]} : vector<128x128xf32> to vector<6x128xf32>
    %cst_61 = arith.constant 0.000000e+00 : f32
    %170 = vector.broadcast %cst_61 : f32 to vector<2x128xf32>
    %171 = tpu.concatenate %169, %170 in 0 : vector<6x128xf32>, vector<2x128xf32> -> vector<8x128xf32>
    %172 = vector.extract_strided_slice %32 {offsets = [74, 0], sizes = [6, 128], strides = [1, 1]} : vector<128x128xf32> to vector<6x128xf32>
    %cst_62 = arith.constant 0.000000e+00 : f32
    %173 = vector.broadcast %cst_62 : f32 to vector<2x128xf32>
    %174 = tpu.concatenate %172, %173 in 0 : vector<6x128xf32>, vector<2x128xf32> -> vector<8x128xf32>
    %175 = vector.extract_strided_slice %32 {offsets = [82, 0], sizes = [6, 128], strides = [1, 1]} : vector<128x128xf32> to vector<6x128xf32>
    %cst_63 = arith.constant 0.000000e+00 : f32
    %176 = vector.broadcast %cst_63 : f32 to vector<2x128xf32>
    %177 = tpu.concatenate %175, %176 in 0 : vector<6x128xf32>, vector<2x128xf32> -> vector<8x128xf32>
    %178 = vector.extract_strided_slice %32 {offsets = [90, 0], sizes = [6, 128], strides = [1, 1]} : vector<128x128xf32> to vector<6x128xf32>
    %cst_64 = arith.constant 0.000000e+00 : f32
    %179 = vector.broadcast %cst_64 : f32 to vector<2x128xf32>
    %180 = tpu.concatenate %178, %179 in 0 : vector<6x128xf32>, vector<2x128xf32> -> vector<8x128xf32>
    %181 = tpu.concatenate %171, %174, %177, %180 in 0 : vector<8x128xf32>, vector<8x128xf32>, vector<8x128xf32>, vector<8x128xf32> -> vector<32x128xf32>
    %182 = arith.truncf %181 : vector<32x128xf32> to vector<32x128xbf16>
    %c1408 = arith.constant 1408 : index
    %c0_65 = arith.constant 0 : index
    %183 = vector.load %arg2[%c1408, %c0_65] : memref<2048x128xbf16, #tpu.memory_space<vmem>>, vector<128x128xbf16>
    %cst_66 = arith.constant dense<0.000000e+00> : vector<32x128xf32>
    %184 = tpu.matmul %182, %183, %cst_66 {dimension_numbers = #tpu.dot_dimension_numbers<[1], [0], [0], [1], [0, 0, 1, 1], [], []>} : vector<32x128xbf16>, vector<128x128xbf16>, vector<32x128xf32> -> vector<32x128xf32>
    %185 = arith.addf %168, %184 : vector<32x128xf32>
    %cst_67 = arith.constant 0.000000e+00 : f32
    %186 = vector.broadcast %cst_67 : f32 to vector<2x128xf32>
    %187 = vector.extract_strided_slice %32 {offsets = [40, 0], sizes = [6, 128], strides = [1, 1]} : vector<128x128xf32> to vector<6x128xf32>
    %188 = tpu.concatenate %186, %187 in 0 : vector<2x128xf32>, vector<6x128xf32> -> vector<8x128xf32>
    %cst_68 = arith.constant 0.000000e+00 : f32
    %189 = vector.broadcast %cst_68 : f32 to vector<2x128xf32>
    %190 = vector.extract_strided_slice %32 {offsets = [48, 0], sizes = [6, 128], strides = [1, 1]} : vector<128x128xf32> to vector<6x128xf32>
    %191 = tpu.concatenate %189, %190 in 0 : vector<2x128xf32>, vector<6x128xf32> -> vector<8x128xf32>
    %cst_69 = arith.constant 0.000000e+00 : f32
    %192 = vector.broadcast %cst_69 : f32 to vector<2x128xf32>
    %193 = vector.extract_strided_slice %32 {offsets = [56, 0], sizes = [6, 128], strides = [1, 1]} : vector<128x128xf32> to vector<6x128xf32>
    %194 = tpu.concatenate %192, %193 in 0 : vector<2x128xf32>, vector<6x128xf32> -> vector<8x128xf32>
    %cst_70 = arith.constant 0.000000e+00 : f32
    %195 = vector.broadcast %cst_70 : f32 to vector<8x128xf32>
    %196 = tpu.concatenate %188, %191, %194, %195 in 0 : vector<8x128xf32>, vector<8x128xf32>, vector<8x128xf32>, vector<8x128xf32> -> vector<32x128xf32>
    %197 = arith.truncf %196 : vector<32x128xf32> to vector<32x128xbf16>
    %c1536 = arith.constant 1536 : index
    %c0_71 = arith.constant 0 : index
    %198 = vector.load %arg2[%c1536, %c0_71] : memref<2048x128xbf16, #tpu.memory_space<vmem>>, vector<128x128xbf16>
    %cst_72 = arith.constant dense<0.000000e+00> : vector<32x128xf32>
    %199 = tpu.matmul %197, %198, %cst_72 {dimension_numbers = #tpu.dot_dimension_numbers<[1], [0], [0], [1], [0, 0, 1, 1], [], []>} : vector<32x128xbf16>, vector<128x128xbf16>, vector<32x128xf32> -> vector<32x128xf32>
    %200 = arith.addf %185, %199 : vector<32x128xf32>
    %201 = vector.extract_strided_slice %32 {offsets = [8, 0], sizes = [8, 128], strides = [1, 1]} : vector<128x128xf32> to vector<8x128xf32>
    %202 = vector.extract_strided_slice %32 {offsets = [16, 0], sizes = [8, 128], strides = [1, 1]} : vector<128x128xf32> to vector<8x128xf32>
    %203 = vector.extract_strided_slice %32 {offsets = [24, 0], sizes = [8, 128], strides = [1, 1]} : vector<128x128xf32> to vector<8x128xf32>
    %cst_73 = arith.constant 0.000000e+00 : f32
    %204 = vector.broadcast %cst_73 : f32 to vector<8x128xf32>
    %205 = tpu.concatenate %201, %202, %203, %204 in 0 : vector<8x128xf32>, vector<8x128xf32>, vector<8x128xf32>, vector<8x128xf32> -> vector<32x128xf32>
    %206 = arith.truncf %205 : vector<32x128xf32> to vector<32x128xbf16>
    %c1664 = arith.constant 1664 : index
    %c0_74 = arith.constant 0 : index
    %207 = vector.load %arg2[%c1664, %c0_74] : memref<2048x128xbf16, #tpu.memory_space<vmem>>, vector<128x128xbf16>
    %cst_75 = arith.constant dense<0.000000e+00> : vector<32x128xf32>
    %208 = tpu.matmul %206, %207, %cst_75 {dimension_numbers = #tpu.dot_dimension_numbers<[1], [0], [0], [1], [0, 0, 1, 1], [], []>} : vector<32x128xbf16>, vector<128x128xbf16>, vector<32x128xf32> -> vector<32x128xf32>
    %209 = arith.addf %200, %208 : vector<32x128xf32>
    %210 = vector.extract_strided_slice %32 {offsets = [40, 0], sizes = [8, 128], strides = [1, 1]} : vector<128x128xf32> to vector<8x128xf32>
    %211 = vector.extract_strided_slice %32 {offsets = [48, 0], sizes = [8, 128], strides = [1, 1]} : vector<128x128xf32> to vector<8x128xf32>
    %212 = vector.extract_strided_slice %32 {offsets = [56, 0], sizes = [8, 128], strides = [1, 1]} : vector<128x128xf32> to vector<8x128xf32>
    %cst_76 = arith.constant 0.000000e+00 : f32
    %213 = vector.broadcast %cst_76 : f32 to vector<8x128xf32>
    %214 = tpu.concatenate %210, %211, %212, %213 in 0 : vector<8x128xf32>, vector<8x128xf32>, vector<8x128xf32>, vector<8x128xf32> -> vector<32x128xf32>
    %215 = arith.truncf %214 : vector<32x128xf32> to vector<32x128xbf16>
    %c1792 = arith.constant 1792 : index
    %c0_77 = arith.constant 0 : index
    %216 = vector.load %arg2[%c1792, %c0_77] : memref<2048x128xbf16, #tpu.memory_space<vmem>>, vector<128x128xbf16>
    %cst_78 = arith.constant dense<0.000000e+00> : vector<32x128xf32>
    %217 = tpu.matmul %215, %216, %cst_78 {dimension_numbers = #tpu.dot_dimension_numbers<[1], [0], [0], [1], [0, 0, 1, 1], [], []>} : vector<32x128xbf16>, vector<128x128xbf16>, vector<32x128xf32> -> vector<32x128xf32>
    %218 = arith.addf %209, %217 : vector<32x128xf32>
    %219 = vector.extract_strided_slice %32 {offsets = [10, 0], sizes = [6, 128], strides = [1, 1]} : vector<128x128xf32> to vector<6x128xf32>
    %cst_79 = arith.constant 0.000000e+00 : f32
    %220 = vector.broadcast %cst_79 : f32 to vector<2x128xf32>
    %221 = tpu.concatenate %219, %220 in 0 : vector<6x128xf32>, vector<2x128xf32> -> vector<8x128xf32>
    %222 = vector.extract_strided_slice %32 {offsets = [18, 0], sizes = [6, 128], strides = [1, 1]} : vector<128x128xf32> to vector<6x128xf32>
    %cst_80 = arith.constant 0.000000e+00 : f32
    %223 = vector.broadcast %cst_80 : f32 to vector<2x128xf32>
    %224 = tpu.concatenate %222, %223 in 0 : vector<6x128xf32>, vector<2x128xf32> -> vector<8x128xf32>
    %225 = vector.extract_strided_slice %32 {offsets = [26, 0], sizes = [6, 128], strides = [1, 1]} : vector<128x128xf32> to vector<6x128xf32>
    %cst_81 = arith.constant 0.000000e+00 : f32
    %226 = vector.broadcast %cst_81 : f32 to vector<2x128xf32>
    %227 = tpu.concatenate %225, %226 in 0 : vector<6x128xf32>, vector<2x128xf32> -> vector<8x128xf32>
    %cst_82 = arith.constant 0.000000e+00 : f32
    %228 = vector.broadcast %cst_82 : f32 to vector<8x128xf32>
    %229 = tpu.concatenate %221, %224, %227, %228 in 0 : vector<8x128xf32>, vector<8x128xf32>, vector<8x128xf32>, vector<8x128xf32> -> vector<32x128xf32>
    %230 = arith.truncf %229 : vector<32x128xf32> to vector<32x128xbf16>
    %c1920 = arith.constant 1920 : index
    %c0_83 = arith.constant 0 : index
    %231 = vector.load %arg2[%c1920, %c0_83] : memref<2048x128xbf16, #tpu.memory_space<vmem>>, vector<128x128xbf16>
    %cst_84 = arith.constant dense<0.000000e+00> : vector<32x128xf32>
    %232 = tpu.matmul %230, %231, %cst_84 {dimension_numbers = #tpu.dot_dimension_numbers<[1], [0], [0], [1], [0, 0, 1, 1], [], []>} : vector<32x128xbf16>, vector<128x128xbf16>, vector<32x128xf32> -> vector<32x128xf32>
    %233 = arith.addf %218, %232 : vector<32x128xf32>
    %c0_85 = arith.constant 0 : index
    %c0_86 = arith.constant 0 : index
    %234 = vector.load %arg6[%c0_85, %c0_86] : memref<1x128xf32, #tpu.memory_space<vmem>>, vector<1x128xf32>
    %c0_87 = arith.constant 0 : index
    %c0_88 = arith.constant 0 : index
    %235 = vector.load %arg7[%c0_87, %c0_88] : memref<1x128xf32, #tpu.memory_space<vmem>>, vector<1x128xf32>
    %cst_89 = arith.constant dense<0.000000e+00> : vector<128xf32>
    %236 = vector.multi_reduction <add>, %233, %cst_89 [0] : vector<32x128xf32> to vector<128xf32>
    %237 = vector.shape_cast %236 : vector<128xf32> to vector<1x128xf32>
    %238 = arith.mulf %233, %233 : vector<32x128xf32>
    %cst_90 = arith.constant dense<0.000000e+00> : vector<128xf32>
    %239 = vector.multi_reduction <add>, %238, %cst_90 [0] : vector<32x128xf32> to vector<128xf32>
    %240 = vector.shape_cast %239 : vector<128xf32> to vector<1x128xf32>
    %cst_91 = arith.constant 3.125000e-02 : f32
    %241 = vector.broadcast %cst_91 : f32 to vector<1x128xf32>
    %242 = arith.mulf %237, %241 : vector<1x128xf32>
    %cst_92 = arith.constant 3.125000e-02 : f32
    %243 = vector.broadcast %cst_92 : f32 to vector<1x128xf32>
    %244 = arith.mulf %240, %243 : vector<1x128xf32>
    %245 = arith.mulf %242, %242 : vector<1x128xf32>
    %246 = arith.subf %244, %245 : vector<1x128xf32>
    %cst_93 = arith.constant 0.000000e+00 : f32
    %247 = vector.broadcast %cst_93 : f32 to vector<1x128xf32>
    %248 = arith.maximumf %246, %247 : vector<1x128xf32>
    %cst_94 = arith.constant 9.99999974E-6 : f32
    %249 = vector.broadcast %cst_94 : f32 to vector<1x128xf32>
    %250 = arith.addf %248, %249 : vector<1x128xf32>
    %251 = math.rsqrt %250 : vector<1x128xf32>
    %252 = arith.mulf %234, %251 : vector<1x128xf32>
    %253 = arith.mulf %242, %252 : vector<1x128xf32>
    %254 = arith.subf %235, %253 : vector<1x128xf32>
    %255 = vector.broadcast %252 : vector<1x128xf32> to vector<32x128xf32>
    %256 = arith.mulf %233, %255 : vector<32x128xf32>
    %257 = vector.broadcast %254 : vector<1x128xf32> to vector<32x128xf32>
    %258 = arith.addf %256, %257 : vector<32x128xf32>
    %cst_95 = arith.constant 0.000000e+00 : f32
    %259 = vector.broadcast %cst_95 : f32 to vector<32x128xf32>
    %260 = arith.cmpf ogt, %258, %259 : vector<32x128xf32>
    %cst_96 = arith.constant 2.000000e-01 : f32
    %261 = vector.broadcast %cst_96 : f32 to vector<32x128xf32>
    %262 = arith.mulf %261, %258 : vector<32x128xf32>
    %263 = arith.select %260, %258, %262 : vector<32x128xi1>, vector<32x128xf32>
    %264 = vector.extract_strided_slice %263 {offsets = [0, 0], sizes = [2, 128], strides = [1, 1]} : vector<32x128xf32> to vector<2x128xf32>
    %265 = vector.extract_strided_slice %263 {offsets = [2, 0], sizes = [2, 128], strides = [1, 1]} : vector<32x128xf32> to vector<2x128xf32>
    %266 = vector.extract_strided_slice %263 {offsets = [4, 0], sizes = [2, 128], strides = [1, 1]} : vector<32x128xf32> to vector<2x128xf32>
    %267 = vector.extract_strided_slice %263 {offsets = [6, 0], sizes = [2, 128], strides = [1, 1]} : vector<32x128xf32> to vector<2x128xf32>
    %268 = vector.extract_strided_slice %263 {offsets = [8, 0], sizes = [2, 128], strides = [1, 1]} : vector<32x128xf32> to vector<2x128xf32>
    %269 = vector.extract_strided_slice %263 {offsets = [10, 0], sizes = [2, 128], strides = [1, 1]} : vector<32x128xf32> to vector<2x128xf32>
    %270 = vector.extract_strided_slice %263 {offsets = [12, 0], sizes = [2, 128], strides = [1, 1]} : vector<32x128xf32> to vector<2x128xf32>
    %271 = vector.extract_strided_slice %263 {offsets = [14, 0], sizes = [2, 128], strides = [1, 1]} : vector<32x128xf32> to vector<2x128xf32>
    %272 = vector.extract_strided_slice %263 {offsets = [16, 0], sizes = [2, 128], strides = [1, 1]} : vector<32x128xf32> to vector<2x128xf32>
    %273 = vector.extract_strided_slice %263 {offsets = [18, 0], sizes = [2, 128], strides = [1, 1]} : vector<32x128xf32> to vector<2x128xf32>
    %274 = vector.extract_strided_slice %263 {offsets = [20, 0], sizes = [2, 128], strides = [1, 1]} : vector<32x128xf32> to vector<2x128xf32>
    %275 = vector.extract_strided_slice %263 {offsets = [22, 0], sizes = [2, 128], strides = [1, 1]} : vector<32x128xf32> to vector<2x128xf32>
    %276 = vector.extract_strided_slice %263 {offsets = [24, 0], sizes = [2, 128], strides = [1, 1]} : vector<32x128xf32> to vector<2x128xf32>
    %277 = vector.extract_strided_slice %263 {offsets = [26, 0], sizes = [2, 128], strides = [1, 1]} : vector<32x128xf32> to vector<2x128xf32>
    %278 = vector.extract_strided_slice %263 {offsets = [28, 0], sizes = [2, 128], strides = [1, 1]} : vector<32x128xf32> to vector<2x128xf32>
    %279 = vector.extract_strided_slice %263 {offsets = [30, 0], sizes = [2, 128], strides = [1, 1]} : vector<32x128xf32> to vector<2x128xf32>
    %280 = tpu.concatenate %264, %265, %266, %267, %268, %269, %270, %271, %272, %273, %274, %275, %276, %277, %278, %279 in 1 : vector<2x128xf32>, vector<2x128xf32>, vector<2x128xf32>, vector<2x128xf32>, vector<2x128xf32>, vector<2x128xf32>, vector<2x128xf32>, vector<2x128xf32>, vector<2x128xf32>, vector<2x128xf32>, vector<2x128xf32>, vector<2x128xf32>, vector<2x128xf32>, vector<2x128xf32>, vector<2x128xf32>, vector<2x128xf32> -> vector<2x2048xf32>
    %281 = arith.truncf %280 : vector<2x2048xf32> to vector<2x2048xbf16>
    %c0_97 = arith.constant 0 : index
    %c0_98 = arith.constant 0 : index
    %282 = vector.load %arg3[%c0_97, %c0_98] : memref<2048x128xbf16, #tpu.memory_space<vmem>>, vector<2048x128xbf16>
    %cst_99 = arith.constant dense<0.000000e+00> : vector<2x128xf32>
    %283 = tpu.matmul %281, %282, %cst_99 {dimension_numbers = #tpu.dot_dimension_numbers<[1], [0], [0], [1], [0, 0, 1, 1], [], []>} : vector<2x2048xbf16>, vector<2048x128xbf16>, vector<2x128xf32> -> vector<2x128xf32>
    %cst_100 = arith.constant 0.000000e+00 : f32
    %284 = vector.broadcast %cst_100 : f32 to vector<2x128xf32>
    %285 = arith.subf %284, %283 : vector<2x128xf32>
    %286 = math.exp %285 : vector<2x128xf32>
    %cst_101 = arith.constant 1.000000e+00 : f32
    %287 = vector.broadcast %cst_101 : f32 to vector<2x128xf32>
    %288 = arith.addf %287, %286 : vector<2x128xf32>
    %cst_102 = arith.constant 1.000000e+00 : f32
    %289 = vector.broadcast %cst_102 : f32 to vector<2x128xf32>
    %290 = arith.divf %289, %288 : vector<2x128xf32>
    %c0_103 = arith.constant 0 : index
    %c0_104 = arith.constant 0 : index
    %291 = vector.load %arg8[%c0_103, %c0_104] : memref<2x128xf32, #tpu.memory_space<vmem>>, vector<2x128xf32>
    tpu.vector_store %arg8[%c0_103, %c0_104], %290 {strides = array<i32>} : memref<2x128xf32, #tpu.memory_space<vmem>>, vector<2x128xf32>,
    return
  }
}

</mosaic_0001>

<bundles_post_ra>
// kernel: tpu_custom_call.1
= control target key start
LH: loop header
LB: loop body
LE: loop exit
PB: predicated region body
PF: predicated region fallthrough
CT: control target
= control target key end

     0   :  { %13 = vsyncpa [#allocation3], 0  ;;  %s5994_s0 = inlined_call_operand.hbm [shape: bf16[128,128], index: 0, kind: input, shape index: {}]   ;;  %s5995_s1 = inlined_call_operand.hbm [shape: bf16[128,128], index: 1, kind: input, shape index: {}]   ;;  %s5996_s2 = inlined_call_operand.hbm [shape: bf16[2048,128], index: 2, kind: input, shape index: {}]   ;;  %s5997_s3 = inlined_call_operand.hbm [shape: bf16[2048,128], index: 3, kind: input, shape index: {}]   ;;  %s5998_s4 = inlined_call_operand.vmem [shape: f32[1,128], index: 4, kind: input, shape index: {}]   ;;  %s5999_s5 = inlined_call_operand.vmem [shape: f32[1,128], index: 5, kind: input, shape index: {}]   ;;  %s6000_s6 = inlined_call_operand.vmem [shape: f32[1,128], index: 6, kind: input, shape index: {}]   ;;  %s6001_s7 = inlined_call_operand.vmem [shape: f32[1,128], index: 7, kind: input, shape index: {}]   ;;  %s6002_s8 = inlined_call_operand.hbm [shape: f32[2,128], index: 8, kind: output, shape index: {}]  }
   0x1   :  { %14 = vsyncpa [#allocation6], 0 }
   0x2   :  { %15 = vsyncpa [#allocation9], 0 }
   0x3   :  { %16 = vsyncpa [#allocation4], 0  ;;  %s5418_s27 = smov [#allocation5]   ;;  %s5419_s29 = smov [#allocation2]  }
   0x4   :  { %s34_s28 = sshll.u32 %s5418_s27, 4  ;;  %s22_s30 = sshll.u32 %s5419_s29, 4  ;;  %s35_s28 = int_to_ptr.vmem [resolvable:$true] %s34_s28  ;;  %s5472_s30 = int_to_ptr.vmem [resolvable:$true] %s22_s30 }
   0x5   :  { %s5300_s11 = scalar_lea.hbm %s5995_s1, 1024 }
   0x6   :  { %p5301_p0 = scmp.ne.s32.totalorder %s5995_s1, %s5300_s11  ;;  %p5304_p1 = scmp.lt.u32.totalorder %s5300_s11, %s5995_s1 }
   0x8   :  { %p5306_p2 = pnand %p5304_p1, %p5301_p0 }
   0xa   :  { %5309 = shalt.err (!%p5306_p2)
}
   0xb   :  { %s5310_s16 = scalar_lea.vmem %s35_s28, 1024  ;;  %p5315_p4 = scmp.lt.s32.totalorder %s35_s28, %s35_s28 }
   0xc   :  { %p5311_p3 = scmp.ne.s32.totalorder %s35_s28, %s5310_s16  ;;  %p5316_p5 = scmp.lt.s32.totalorder %s5310_s16, %s5310_s16 }
   0xe   :  { %p5317_p6 = por %p5316_p5, %p5315_p4 }
  0x10   :  { %p5318_p7 = pnand %p5317_p6, %p5311_p3 }
  0x12   :  { %5321 = shalt.err (!%p5318_p7)
}
  0x13   :  { %s5420_s17 = smov 64   ;;  %s5421_s18 = smov 4  }
  0x14   :  { %40 = dma.hbm_to_vmem [thread:$0]  %s5995_s1, 1024, %s35_s28, [#allocation6], %s5420_s17, %s5420_s17, %s5421_s18  }
  0x15   :  { %s5322_s23 = scalar_lea.hbm %s5994_s0, 1024 }
  0x16   :  { %p5323_p8 = scmp.ne.s32.totalorder %s5994_s0, %s5322_s23  ;;  %p5326_p9 = scmp.lt.u32.totalorder %s5322_s23, %s5994_s0 }
  0x18   :  { %p5328_p10 = pnand %p5326_p9, %p5323_p8 }
  0x1a   :  { %5331 = shalt.err (!%p5328_p10)
}
  0x1b   :  { %s5332_s29 = scalar_lea.vmem %s5472_s30, 1024  ;;  %p5337_p12 = scmp.lt.s32.totalorder %s5472_s30, %s5472_s30 }
  0x1c   :  { %p5333_p11 = scmp.ne.s32.totalorder %s5472_s30, %s5332_s29  ;;  %p5338_p13 = scmp.lt.s32.totalorder %s5332_s29, %s5332_s29 }
  0x1e   :  { %p5339_p0 = por %p5338_p13, %p5337_p12 }
  0x20   :  { %p5340_p1 = pnand %p5339_p0, %p5333_p11 }
  0x22   :  { %5343 = shalt.err (!%p5340_p1)
}
  0x23   :  { %28 = dma.hbm_to_vmem [thread:$0]  %s5994_s0, 1024, %s5472_s30, [#allocation3], %s5420_s17, %s5420_s17, %s5421_s18  }
  0x24   :  { %s5422_s9 = smov [#allocation7]   ;;  %s5423_s11 = smov [#allocation8]  }
  0x25   :  { %s46_s10 = sshll.u32 %s5422_s9, 4  ;;  %s58_s12 = sshll.u32 %s5423_s11, 4  ;;  %s47_s10 = int_to_ptr.vmem [resolvable:$true] %s46_s10  ;;  %s5509_s12 = int_to_ptr.vmem [resolvable:$true] %s58_s12 }
  0x26   :  { %s5344_s15 = scalar_lea.hbm %s5996_s2, 16384 }
  0x27   :  { %p5345_p2 = scmp.ne.s32.totalorder %s5996_s2, %s5344_s15  ;;  %p5348_p3 = scmp.lt.u32.totalorder %s5344_s15, %s5996_s2 }
  0x29   :  { %p5350_p4 = pnand %p5348_p3, %p5345_p2 }
  0x2b   :  { %5353 = shalt.err (!%p5350_p4)
}
  0x2c   :  { %s5354_s0 = scalar_lea.vmem %s47_s10, 16384  ;;  %p5359_p6 = scmp.lt.s32.totalorder %s47_s10, %s47_s10 }
  0x2d   :  { %p5355_p5 = scmp.ne.s32.totalorder %s47_s10, %s5354_s0  ;;  %p5360_p7 = scmp.lt.s32.totalorder %s5354_s0, %s5354_s0 }
  0x2f   :  { %p5361_p8 = por %p5360_p7, %p5359_p6 }
  0x31   :  { %p5362_p9 = pnand %p5361_p8, %p5355_p5 }
  0x33   :  { %5365 = shalt.err (!%p5362_p9)
}
  0x34   :  { %52 = dma.hbm_to_vmem [thread:$0]  %s5996_s2, 16384, %s47_s10, [#allocation6], %s5420_s17, %s5420_s17, %s5421_s18  }
  0x35   :  { %s5366_s25 = scalar_lea.hbm %s5997_s3, 16384 }
  0x36   :  { %p5367_p10 = scmp.ne.s32.totalorder %s5997_s3, %s5366_s25  ;;  %p5370_p11 = scmp.lt.u32.totalorder %s5366_s25, %s5997_s3 }
  0x38   :  { %p5372_p12 = pnand %p5370_p11, %p5367_p10 }
  0x3a   :  { %5375 = shalt.err (!%p5372_p12)
}
  0x3b   :  { %s5376_s28 = scalar_lea.vmem %s5509_s12, 16384  ;;  %p5381_p0 = scmp.lt.s32.totalorder %s5509_s12, %s5509_s12 }
  0x3c   :  { %p5377_p13 = scmp.ne.s32.totalorder %s5509_s12, %s5376_s28  ;;  %p5382_p1 = scmp.lt.s32.totalorder %s5376_s28, %s5376_s28 }
  0x3e   :  { %p5383_p2 = por %p5382_p1, %p5381_p0 }
  0x40   :  { %p5384_p3 = pnand %p5383_p2, %p5377_p13 }
  0x42   :  { %5387 = shalt.err (!%p5384_p3)
}
  0x43   :  { %64 = dma.hbm_to_vmem [thread:$0]  %s5997_s3, 16384, %s5509_s12, [#allocation9], %s5420_s17, %s5420_s17, %s5421_s18  }
  0x44   :  { %5410 = dma.done.wait [#allocation3], 1024  }
  0x45   :  { %5411 = vsyncadd [#allocation3], 4294966272 }
  0x46   :  { %5412 = dma.done.wait [#allocation6], 17408  }
  0x47   :  { %5413 = vsyncadd [#allocation6], 4294949888 }
  0x48   :  { %5414 = dma.done.wait [#allocation9], 16384  }
  0x49   :  { %5415 = vsyncadd [#allocation9], 4294950912  ;;  %v5020_v0 = vld [vmem:[#allocation5] sm:$0xff]   ;;  %v5021_v1 = vld [vmem:[#allocation5 + $0x8] sm:$0xff]   ;;  %vm476_vm0 = vcmask 1041408   ;;  %vm838_vm7 = vcmask 1045504  }
  0x4a   :  { %4599 = vmatprep.subr.bf16.mxu0 %v5020_v0  ;;  %v5022_v2 = vld [vmem:[#allocation5 + $0x10] sm:$0xff]   ;;  %v5023_v3 = vld [vmem:[#allocation5 + $0x18] sm:$0xff]   ;;  %v5028_v4 = vld [vmem:[#allocation2] sm:$0xff]   ;;  %vm5425_vm8 = vmmov 1  }
  0x4b   :  { %4600 = vmatpush3.bf16.msra.mxu0 %v5020_v0  ;;  %4615 = vmatprep.mubr.bf16.mxu0 %v5028_v4  ;;  %v5024_v5 = vld [vmem:[#allocation5 + $0x20] sm:$0xff]   ;;  %v5025_v6 = vld [vmem:[#allocation5 + $0x28] sm:$0xff]   ;;  %v5026_v7 = vld [vmem:[#allocation5 + $0x30] sm:$0xff]  }
  0x4c   :  { %4601 = vmatprep.subr.bf16.mxu0 %v5021_v1  ;;  %v5027_v8 = vld [vmem:[#allocation5 + $0x38] sm:$0xff]   ;;  %v5029_v9 = vld [vmem:[#allocation2 + $0x8] sm:$0xff]   ;;  %v5030_v10 = vld [vmem:[#allocation2 + $0x10] sm:$0xff]  }
  0x4d   :  { %v5031_v11 = vld [vmem:[#allocation2 + $0x18] sm:$0xff]   ;;  %v5032_v12 = vld [vmem:[#allocation2 + $0x20] sm:$0xff]   ;;  %v5033_v13 = vld [vmem:[#allocation2 + $0x28] sm:$0xff]  }
  0x4e   :  { %v5034_v14 = vld [vmem:[#allocation2 + $0x30] sm:$0xff]   ;;  %v5035_v15 = vld [vmem:[#allocation2 + $0x38] sm:$0xff]   ;;  %v5036_v16 = vld [vmem:[#allocation7 + $0x40] sm:$0xff]  }
  0x4f   :  { %4602 = vmatpush3.bf16.msra.mxu0 %v5021_v1  ;;  %v5037_v17 = vld [vmem:[#allocation7 + $0xc0] sm:$0xff]   ;;  %v5038_v18 = vld [vmem:[#allocation7 + $0x48] sm:$0xff]   ;;  %v5040_v20 = vld [vmem:[#allocation7 + $0x50] sm:$0xff]  }
  0x50   :  { %4603 = vmatprep.subr.bf16.mxu0 %v5022_v2  ;;  %4691 = vmatprep.subr.bf16.mxu1 %v5037_v17  ;;  %v5039_v19 = vld [vmem:[#allocation7 + $0xc8] sm:$0xff]   ;;  %v5041_v21 = vld [vmem:[#allocation7 + $0xd0] sm:$0xff]   ;;  %v5042_v22 = vld [vmem:[#allocation7 + $0x58] sm:$0xff]  }
  0x51   :  { %4692 = vmatpush3.bf16.msra.mxu1 %v5037_v17  ;;  %v5043_v23 = vld [vmem:[#allocation7 + $0xd8] sm:$0xff]   ;;  %v5044_v24 = vld [vmem:[#allocation7 + $0x60] sm:$0xff]   ;;  %v5046_v26 = vld [vmem:[#allocation7 + $0x68] sm:$0xff]  }
  0x52   :  { %4693 = vmatprep.subr.bf16.mxu1 %v5039_v19  ;;  %v5045_v25 = vld [vmem:[#allocation7 + $0xe0] sm:$0xff]   ;;  %v5047_v27 = vld [vmem:[#allocation7 + $0xe8] sm:$0xff]   ;;  %v5048_v28 = vld [vmem:[#allocation7 + $0x70] sm:$0xff]  }
  0x53   :  { %4604 = vmatpush3.bf16.msra.mxu0 %v5022_v2  ;;  %v5049_v29 = vld [vmem:[#allocation7 + $0xf0] sm:$0xff]   ;;  %v5050_v30 = vld [vmem:[#allocation7 + $0x78] sm:$0xff]   ;;  %v5546_v32 = vld [vmem:[#allocation7] sm:$0xff]  }
  0x54   :  { %4605 = vmatprep.subr.bf16.mxu0 %v5023_v3  ;;  %v5051_v31 = vld [vmem:[#allocation7 + $0xf8] sm:$0xff]   ;;  %v5549_v33 = vld [vmem:[#allocation7 + $0x100] sm:$0xff]   ;;  %vm5671_vm5 = vmneg %vm476_vm0 }
  0x55   :  { %4694 = vmatpush3.bf16.msra.mxu1 %v5039_v19  ;;  %vm5692_vm9 = vmpackc.low %vm5671_vm5, %vm5425_vm8 }
  0x56   :  { %4695 = vmatprep.subr.bf16.mxu1 %v5041_v21  ;;  %vm5701_vm10 = vmpackc.low %vm838_vm7, %vm5425_vm8 }
  0x57   :  { %4606 = vmatpush3.bf16.msra.mxu0 %v5023_v3  ;;  %vm5709_vm13 = vmpackc.low %vm838_vm7, %vm838_vm7 }
  0x58   :  { %4607 = vmatprep.subr.bf16.mxu0 %v5024_v5  ;;  %vm5743_vm15 = vmpackc.low %vm5671_vm5, %vm5671_vm5 }
  0x59   :  { %4696 = vmatpush3.bf16.msra.mxu1 %v5041_v21 }
  0x5a   :  { %4697 = vmatprep.subr.bf16.mxu1 %v5043_v23 }
  0x5b   :  { %4608 = vmatpush3.bf16.msra.mxu0 %v5024_v5 }
  0x5c   :  { %4609 = vmatprep.subr.bf16.mxu0 %v5025_v6 }
  0x5d   :  { %4698 = vmatpush3.bf16.msra.mxu1 %v5043_v23 }
  0x5e   :  { %4699 = vmatprep.subr.bf16.mxu1 %v5045_v25 }
  0x5f   :  { %4610 = vmatpush3.bf16.msra.mxu0 %v5025_v6 }
  0x60   :  { %4611 = vmatprep.subr.bf16.mxu0 %v5026_v7 }
  0x61   :  { %4700 = vmatpush3.bf16.msra.mxu1 %v5045_v25 }
  0x62   :  { %4701 = vmatprep.subr.bf16.mxu1 %v5047_v27 }
  0x63   :  { %4612 = vmatpush3.bf16.msra.mxu0 %v5026_v7 }
  0x64   :  { %4613 = vmatprep.subr.bf16.mxu0 %v5027_v8 }
  0x65   :  { %4702 = vmatpush3.bf16.msra.mxu1 %v5047_v27 }
  0x66   :  { %4703 = vmatprep.subr.bf16.mxu1 %v5049_v29 }
  0x67   :  { %4614 = vmatpush3.bf16.msra.mxu0 %v5027_v8 }
  0x68   :  { %4631 = vmatprep.subr.bf16.mxu0 %v5036_v16 }
  0x69   :  { %4704 = vmatpush3.bf16.msra.mxu1 %v5049_v29 }
  0x6a   :  { %4616 = vmatmul.mubr.bf16.vlgmr.msra.gmra.mrb[0].mxu0 %v5029_v9  ;;  %4705 = vmatprep.subr.bf16.mxu1 %v5051_v31 }
  0x6b   :  { %4619 = vmatprep.mubr.bf16.mxu0 %v5030_v10  ;;  %4632 = vmatpush3.bf16.msra.mxu0 %v5036_v16 }
  0x6c   :  { %4633 = vmatprep.subr.bf16.mxu0 %v5038_v18 }
  0x6d   :  { %4706 = vmatpush3.bf16.msra.mxu1 %v5051_v31 }
  0x6e   :  { %4711 = vmatprep.subr.bf16.mxu1 %v5549_v33 }
  0x6f   :  { %4634 = vmatpush3.bf16.msra.mxu0 %v5038_v18 }
  0x70   :  { %4635 = vmatprep.subr.bf16.mxu0 %v5040_v20 }
  0x72   :  { %4620 = vmatmul.mubr.bf16.gmra.mrb[4].mxu0 %v5031_v11 }
  0x73   :  { %4623 = vmatprep.mubr.bf16.mxu0 %v5032_v12  ;;  %4636 = vmatpush3.bf16.msra.mxu0 %v5040_v20 }
  0x74   :  { %4637 = vmatprep.subr.bf16.mxu0 %v5042_v22 }
  0x77   :  { %4638 = vmatpush3.bf16.msra.mxu0 %v5042_v22 }
  0x78   :  { %4639 = vmatprep.subr.bf16.mxu0 %v5044_v24 }
  0x7a   :  { %4624 = vmatmul.mubr.bf16.gmra.mrb[8].mxu0 %v5033_v13 }
  0x7b   :  { %4627 = vmatprep.mubr.bf16.mxu0 %v5034_v14  ;;  %4640 = vmatpush3.bf16.msra.mxu0 %v5044_v24 }
  0x7c   :  { %4641 = vmatprep.subr.bf16.mxu0 %v5046_v26 }
  0x7f   :  { %4642 = vmatpush3.bf16.msra.mxu0 %v5046_v26 }
  0x80   :  { %4643 = vmatprep.subr.bf16.mxu0 %v5048_v28 }
  0x82   :  { %4628 = vmatmul.mubr.bf16.gmra.mrb[12].mxu0 %v5035_v15 }
  0x83   :  { %4644 = vmatpush3.bf16.msra.mxu0 %v5048_v28 }
  0x84   :  { %4645 = vmatprep.subr.bf16.mxu0 %v5050_v30 }
  0x87   :  { %4646 = vmatpush3.bf16.msra.mxu0 %v5050_v30 }
  0x88   :  { %4651 = vmatprep.subr.bf16.mxu0 %v5546_v32 }
 0x13d   :  { %v5552_v34 = vpop.f32.mrb[0].mxu0 }
 0x13e   :  { %v5554_v35 = vpop.f32.mrb[1].mxu0  ;;  %v336_v41 = vmul.f32 %v5552_v34, %v5552_v34 }
 0x13f   :  { %v5556_v36 = vpop.f32.mrb[2].mxu0  ;;  %v334_v38 = vmul.f32 %v5554_v35, %v5554_v35 }
 0x140   :  { %v5558_v37 = vpop.f32.mrb[3].mxu0  ;;  %v337_v44 = vmul.f32 %v5556_v36, %v5556_v36 }
 0x141   :  { %v313_v39 = vadd.f32 %v5558_v37, %v5554_v35  ;;  %v335_v40 = vmul.f32 %v5558_v37, %v5558_v37 }
 0x143   :  { %v314_v42 = vadd.f32 %v5552_v34, %v313_v39  ;;  %v350_v43 = vadd.f32 %v335_v40, %v334_v38 }
 0x145   :  { %v351_v45 = vadd.f32 %v350_v43, %v336_v41  ;;  %v5571_v46 = vpop.f32.mrb[4].mxu0  ;;  %v315_v47 = vadd.f32 %v5556_v36, %v314_v42 }
 0x146   :  { %v5574_v48 = vpop.f32.mrb[5].mxu0  ;;  %v340_v57 = vmul.f32 %v5571_v46, %v5571_v46 }
 0x147   :  { %v316_v49 = vadd.f32 %v315_v47, %v5574_v48  ;;  %v338_v50 = vmul.f32 %v5574_v48, %v5574_v48  ;;  %v352_v51 = vadd.f32 %v351_v45, %v337_v44  ;;  %v5579_v52 = vpop.f32.mrb[6].mxu0 }
 0x148   :  { %v5581_v53 = vpop.f32.mrb[7].mxu0  ;;  %v341_v60 = vmul.f32 %v5579_v52, %v5579_v52 }
 0x149   :  { %v353_v54 = vadd.f32 %v352_v51, %v338_v50  ;;  %v317_v55 = vadd.f32 %v316_v49, %v5581_v53  ;;  %v339_v56 = vmul.f32 %v5581_v53, %v5581_v53 }
 0x14b   :  { %v318_v58 = vadd.f32 %v5571_v46, %v317_v55  ;;  %v354_v59 = vadd.f32 %v353_v54, %v339_v56 }
 0x14d   :  { %v355_v61 = vadd.f32 %v354_v59, %v340_v57  ;;  %v5591_v62 = vpop.f32.mrb[8].mxu0  ;;  %v319_v63 = vadd.f32 %v5579_v52, %v318_v58 }
 0x14e   :  { %v5594_v0 = vpop.f32.mrb[9].mxu0  ;;  %v344_v9 = vmul.f32 %v5591_v62, %v5591_v62 }
 0x14f   :  { %v320_v1 = vadd.f32 %v319_v63, %v5594_v0  ;;  %v342_v2 = vmul.f32 %v5594_v0, %v5594_v0  ;;  %v356_v3 = vadd.f32 %v355_v61, %v341_v60  ;;  %v5599_v4 = vpop.f32.mrb[10].mxu0  ;;  %v382_v60 = vlaneseq  ;;  %v311_v63 = vld [vmem:[%s5998_s4] sm:$0x1] }
 0x150   :  { %v283_v5 = vpop.f32.mrb[11].mxu0  ;;  %v345_v12 = vmul.f32 %v5599_v4, %v5599_v4 }
 0x151   :  { %v357_v6 = vadd.f32 %v356_v3, %v342_v2  ;;  %v321_v7 = vadd.f32 %v320_v1, %v283_v5  ;;  %v343_v8 = vmul.f32 %v283_v5, %v283_v5  ;;  %v383_v61 = vshrl.u32 %v382_v60, 7 }
 0x153   :  { %v322_v10 = vadd.f32 %v5591_v62, %v321_v7  ;;  %v358_v11 = vadd.f32 %v357_v6, %v343_v8  ;;  %v5615_v1 = vsub.s32 0, %v383_v61  ;;  %v312_v6 = vld [vmem:[%s5999_s5] sm:$0x1]  ;;  %v5055_v61 = vld [vmem:[#allocation7 + $0x108] sm:$0xff]  }
 0x155   :  { %v359_v13 = vadd.f32 %v358_v11, %v344_v9  ;;  %v4629_v14 = vpop.f32.mrb[12].mxu0  ;;  %v323_v15 = vadd.f32 %v5599_v4, %v322_v10 }
 0x156   :  { %v296_v16 = vpop.f32.mrb[13].mxu0  ;;  %v348_v25 = vmul.f32 %v4629_v14, %v4629_v14 }
 0x157   :  { %v324_v17 = vadd.f32 %v323_v15, %v296_v16  ;;  %v346_v18 = vmul.f32 %v296_v16, %v296_v16  ;;  %v360_v19 = vadd.f32 %v359_v13, %v345_v12  ;;  %v5607_v20 = vpop.f32.mrb[14].mxu0 }
 0x158   :  { %v299_v21 = vpop.f32.mrb[15].mxu0  ;;  %v349_v28 = vmul.f32 %v5607_v20, %v5607_v20 }
 0x159   :  { %v361_v22 = vadd.f32 %v360_v19, %v346_v18  ;;  %v325_v23 = vadd.f32 %v324_v17, %v299_v21  ;;  %v347_v24 = vmul.f32 %v299_v21, %v299_v21 }
 0x15b   :  { %v326_v26 = vadd.f32 %v4629_v14, %v325_v23  ;;  %v362_v27 = vadd.f32 %v361_v22, %v347_v24 }
 0x15d   :  { %v327_v29 = vadd.f32 %v5607_v20, %v326_v26  ;;  %v363_v30 = vadd.f32 %v362_v27, %v348_v25  ;;  %v5145_v27 = vld [vmem:[#allocation7 + $0x368] sm:$0xff]  }
 0x15f   :  { %v328_v31 = vrot.slane %v327_v29, 4  ;;  %v364_v38 = vadd.f32 %v363_v30, %v349_v28 }
 0x161   :  { %v329_v39 = vadd.f32 %v328_v31, %v327_v29  ;;  %v365_v40 = vrot.slane %v364_v38, 4  ;;  %v5424_v31 = vmov 0.0  }
 0x163   :  { %v330_v41 = vrot.slane %v329_v39, 2  ;;  %v366_v42 = vadd.f32 %v365_v40, %v364_v38 }
 0x165   :  { %v331_v43 = vadd.f32 %v330_v41, %v329_v39  ;;  %v367_v44 = vrot.slane %v366_v42, 2 }
 0x167   :  { %v332_v45 = vrot.slane %v331_v43, 1  ;;  %v368_v47 = vadd.f32 %v367_v44, %v366_v42 }
 0x169   :  { %v333_v49 = vadd.f32 %v332_v45, %v331_v43  ;;  %v369_v50 = vrot.slane %v368_v47, 1 }
 0x16b   :  { %v370_v51 = vadd.f32 %v369_v50, %v368_v47  ;;  %v371_v54 = vmul.f32 0.0078125, %v333_v49  ;;  %v5054_v47 = vld [vmem:[#allocation7 + $0x8] sm:$0xff]  }
 0x16d   :  { %v372_v55 = vmul.f32 0.0078125, %v370_v51  ;;  %v373_v56 = vmul.f32 %v371_v54, %v371_v54 }
 0x16f   :  { %v374_v57 = vsub.f32 %v372_v55, %v373_v56  ;;  %v5164_v55 = vld [vmem:[#allocation8 + $0x40] sm:$0xff]  }
 0x171   :  { %v375_v58 = vmax.f32 %v374_v57, 0.0 }
 0x173   :  { %v376_v59 = vadd.f32 1e-05, %v375_v58 }
 0x175   :  { %5292 = vrsqrt.f32 %v376_v59 }
 0x17f   :  { %v5293_v2 = vpop.eup %5292 }
 0x180   :  { %v378_v3 = vmul.f32 %v5293_v2, %v311_v63 }
 0x182   :  { %v379_v7 = vmul.f32 %v378_v3, %v371_v54  ;;  %v5621_v8 = vrot.slane %v378_v3, %v5615_v1 }
 0x184   :  { %v380_v9 = vsub.f32 %v312_v6, %v379_v7  ;;  %v400_v10 = vmul.f32 %v5621_v8, %v299_v21  ;;  %v395_v11 = vmul.f32 %v5621_v8, %v5594_v0  ;;  %v396_v12 = vmul.f32 %v5621_v8, %v283_v5  ;;  %v5056_v6 = vld [vmem:[#allocation7 + $0x10] sm:$0xff]  }
 0x185   :  { %v397_v13 = vmul.f32 %v5591_v62, %v5621_v8  ;;  %v399_v15 = vmul.f32 %v5621_v8, %v296_v16  ;;  %v391_v17 = vmul.f32 %v5621_v8, %v5574_v48  ;;  %v392_v18 = vmul.f32 %v5621_v8, %v5581_v53 }
 0x186   :  { %v5635_v19 = vrot.slane %v380_v9, %v5615_v1  ;;  %v401_v21 = vmul.f32 %v4629_v14, %v5621_v8  ;;  %v5640_v0 = vmul.f32 %v5571_v46, %v5621_v8  ;;  %v5644_v62 = vmul.f32 %v5579_v52, %v5621_v8 }
 0x187   :  { %v5648_v5 = vmul.f32 %v5621_v8, %v5554_v35  ;;  %v5652_v48 = vmul.f32 %v5621_v8, %v5558_v37  ;;  %v5656_v53 = vmul.f32 %v5552_v34, %v5621_v8  ;;  %v5660_v46 = vmul.f32 %v5556_v36, %v5621_v8 }
 0x188   :  { %v422_v14 = vadd.f32 %v5635_v19, %v400_v10  ;;  %v417_v52 = vadd.f32 %v5635_v19, %v395_v11  ;;  %v418_v16 = vadd.f32 %v5635_v19, %v396_v12  ;;  %v419_v35 = vadd.f32 %v5635_v19, %v397_v13  ;;  %v5138_v12 = vld [vmem:[#allocation7 + $0x330] sm:$0xff]  }
 0x189   :  { %v421_v22 = vadd.f32 %v5635_v19, %v399_v15  ;;  %v413_v37 = vadd.f32 %v5635_v19, %v391_v17  ;;  %v414_v23 = vadd.f32 %v5635_v19, %v392_v18  ;;  %v423_v34 = vadd.f32 %v5635_v19, %v401_v21 }
 0x18a   :  { %vm438_vm1 = vcmp.gt.f32.partialorder %v422_v14, 0.0  ;;  %v454_v24 = vmul.f32 0.2, %v422_v14  ;;  %vm433_vm2 = vcmp.gt.f32.partialorder %v417_v52, 0.0  ;;  %v449_v36 = vmul.f32 0.2, %v417_v52 }
 0x18b   :  { %vm434_vm3 = vcmp.gt.f32.partialorder %v418_v16, 0.0  ;;  %vm435_vm4 = vcmp.gt.f32.partialorder %v419_v35, 0.0  ;;  %v450_v25 = vmul.f32 0.2, %v418_v16  ;;  %v451_v26 = vmul.f32 0.2, %v419_v35 }
 0x18c   :  { %v5675_v28 = vsel %vm433_vm2, %v417_v52, %v449_v36  ;;  %vm437_vm6 = vcmp.gt.f32.partialorder %v421_v22, 0.0  ;;  %v453_v29 = vmul.f32 0.2, %v421_v22  ;;  %v5677_v30 = vsel %vm438_vm1, %v422_v14, %v454_v24  ;;  %v5058_v52 = vld [vmem:[#allocation7 + $0x18] sm:$0xff]  }
 0x18d   :  { %v504_v38 = vpack.c.bf16 %v5675_v28, %v5424_v31  ;;  %v5681_v39 = vsel %vm434_vm3, %v418_v16, %v450_v25  ;;  %v5683_v40 = vsel %vm435_vm4, %v419_v35, %v451_v26  ;;  %v836_v44 = vrot.slane %v5675_v28, 2  ;;  %v5059_v24 = vld [vmem:[#allocation7 + $0x118] sm:$0xff]  }
 0x18e   :  { %v505_v41 = vpack.c.bf16 %v5683_v40, %v5681_v39  ;;  %v5687_v42 = vsel %vm437_vm6, %v421_v22, %v453_v29  ;;  %v841_v45 = vrot.slane %v5681_v39, 2  ;;  %v845_v51 = vrot.slane %v5683_v40, 2 }
 0x18f   :  { %4647 = vmatprep.mubr.bf16.mxu0 %v504_v38  ;;  %v474_v49 = vrot.slane %v5687_v42, 6  ;;  %vm429_vm11 = vcmp.gt.f32.partialorder %v413_v37, 0.0  ;;  %vm430_vm12 = vcmp.gt.f32.partialorder %v414_v23, 0.0  ;;  %v3971_v54 = vpack.c.bf16 %v836_v44, %v5424_v31  ;;  %v5060_v38 = vld [vmem:[#allocation7 + $0x20] sm:$0xff]  }
 0x190   :  { %4648 = vmatmul.mubr.bf16.vlgmr.msra.gmra.mrb[16].mxu0 %v505_v41  ;;  %v5713_v56 = vpack.c.bf16 %v841_v45, %v836_v44  ;;  %v445_v57 = vmul.f32 0.2, %v413_v37  ;;  %v446_v58 = vmul.f32 0.2, %v414_v23  ;;  %v3974_v60 = vpack.c.bf16 %v845_v51, %v841_v45 }
 0x191   :  { %4652 = vmatpush3.bf16.msra.mxu0 %v5546_v32  ;;  %v3947_v59 = vpack.c.bf16 %v474_v49, %v5424_v31  ;;  %vm439_vm14 = vcmp.gt.f32.partialorder %v423_v34, 0.0  ;;  %v455_v63 = vmul.f32 0.2, %v423_v34  ;;  %v479_v2 = vrot.slane %v5677_v30, 6  ;;  %4707 = vmatprep.mubr.msk.bf16.mxu1 %vm5701_vm10, %v3971_v54 }
 0x192   :  { %4653 = vmatprep.subr.bf16.mxu0 %v5054_v47  ;;  %v5725_v3 = vsel %vm429_vm11, %v413_v37, %v445_v57  ;;  %v5728_v32 = vsel %vm430_vm12, %v414_v23, %v446_v58  ;;  %4708 = vmatmul.mubr.msk.bf16.vlgmr.msra.gmra.mrb[0].mxu1 %vm5709_vm13, %v3974_v60  ;;  %v415_v11 = vadd.f32 %v5635_v19, %v5640_v0  ;;  %v5057_v0 = vld [vmem:[#allocation7 + $0x110] sm:$0xff]   ;;  %v5061_v58 = vld [vmem:[#allocation7 + $0x120] sm:$0xff]   ;;  %vm4086_vm11 = vmpackc.low %vm5425_vm8, %vm5671_vm5 }
 0x193   :  { %4667 = vmatprep.mubr.msk.bf16.mxu0 %vm5692_vm9, %v3947_v59  ;;  %v968_v7 = vrot.slane %v5725_v3, 6  ;;  %v972_v9 = vrot.slane %v5728_v32, 6  ;;  %v5736_v10 = vsel %vm439_vm14, %v423_v34, %v455_v63  ;;  %4712 = vmatpush3.bf16.msra.mxu1 %v5549_v33  ;;  %v416_v15 = vadd.f32 %v5635_v19, %v5644_v62  ;;  %v5062_v63 = vld [vmem:[#allocation7 + $0x28] sm:$0xff]   ;;  %vm4116_vm5 = vmpackc.low %vm5425_vm8, %vm838_vm7 }
 0x194   :  { %v483_v13 = vrot.slane %v5736_v10, 6  ;;  %v409_v17 = vadd.f32 %v5635_v19, %v5648_v5  ;;  %v410_v18 = vadd.f32 %v5635_v19, %v5652_v48  ;;  %4713 = vmatprep.subr.bf16.mxu1 %v5055_v61  ;;  %vm431_vm0 = vcmp.gt.f32.partialorder %v415_v11, 0.0 }
 0x195   :  { %v3987_v21 = vpack.c.bf16 %v972_v9, %v968_v7  ;;  %4654 = vmatpush3.bf16.msra.mxu0 %v5054_v47  ;;  %v447_v14 = vmul.f32 0.2, %v415_v11  ;;  %v717_v33 = vpack.c.bf16 %v5736_v10, %v5677_v30  ;;  %vm432_vm1 = vcmp.gt.f32.partialorder %v416_v15, 0.0 }
 0x196   :  { %4655 = vmatprep.subr.bf16.mxu0 %v5056_v6  ;;  %v5761_v62 = vpack.c.bf16 %v483_v13, %v479_v2  ;;  %v448_v5 = vmul.f32 0.2, %v416_v15  ;;  %vm425_vm2 = vcmp.gt.f32.partialorder %v409_v17, 0.0  ;;  %vm426_vm3 = vcmp.gt.f32.partialorder %v410_v18, 0.0 }
 0x197   :  { %4727 = vmatprep.mubr.msk.bf16.mxu1 %vm5743_vm15, %v3987_v21  ;;  %v5765_v48 = vsel %vm431_vm0, %v415_v11, %v447_v14  ;;  %v441_v16 = vmul.f32 0.2, %v409_v17  ;;  %v442_v35 = vmul.f32 0.2, %v410_v18  ;;  %4714 = vmatpush3.bf16.msra.mxu1 %v5055_v61  ;;  %v411_v23 = vadd.f32 %v5635_v19, %v5656_v53 }
 0x198   :  { %v5767_v22 = vsel %vm432_vm1, %v416_v15, %v448_v5  ;;  %v976_v37 = vrot.slane %v5765_v48, 6  ;;  %v412_v34 = vadd.f32 %v5635_v19, %v5660_v46  ;;  %4715 = vmatprep.subr.bf16.mxu1 %v5057_v0  ;;  %v1221_v29 = vpack.c.bf16 %v5728_v32, %v5725_v3  ;;  %v5092_v3 = vld [vmem:[#allocation7 + $0x1c0] sm:$0xff]  }
 0x199   :  { %4656 = vmatpush3.bf16.msra.mxu0 %v5056_v6  ;;  %v980_v36 = vrot.slane %v5767_v22, 6  ;;  %v5775_v25 = vsel %vm425_vm2, %v409_v17, %v441_v16  ;;  %v5777_v26 = vsel %vm426_vm3, %v410_v18, %v442_v35  ;;  %vm427_vm4 = vcmp.gt.f32.partialorder %v411_v23, 0.0 }
 0x19a   :  { %4657 = vmatprep.subr.bf16.mxu0 %v5058_v52  ;;  %v1102_v53 = vpack.c.bf16 %v5777_v26, %v5775_v25  ;;  %v1341_v41 = vrot.slane %v5775_v25, 2  ;;  %v1345_v46 = vrot.slane %v5777_v26, 2  ;;  %vm428_vm6 = vcmp.gt.f32.partialorder %v412_v34, 0.0  ;;  %v5079_v25 = vld [vmem:[#allocation7 + $0x168] sm:$0xff]  }
 0x19b   :  { %v5785_v43 = vpack.c.bf16 %v980_v36, %v976_v37  ;;  %v443_v44 = vmul.f32 0.2, %v411_v23  ;;  %v444_v45 = vmul.f32 0.2, %v412_v34  ;;  %4716 = vmatpush3.bf16.msra.mxu1 %v5057_v0  ;;  %v1222_v47 = vpack.c.bf16 %v5767_v22, %v5765_v48 }
 0x19c   :  { %v5789_v50 = vpack.c.bf16 %v1345_v46, %v1341_v41  ;;  %v5793_v54 = vpack.c.bf16 %v479_v2, %v474_v49  ;;  %v402_v57 = vmul.f32 %v5607_v20, %v5621_v8  ;;  %4717 = vmatprep.subr.bf16.mxu1 %v5059_v24  ;;  %v1598_v61 = vpack.c.bf16 %v5681_v39, %v5675_v28  ;;  %v5066_v41 = vld [vmem:[#allocation7 + $0x38] sm:$0xff]   ;;  %v5116_v28 = vld [vmem:[#allocation7 + $0x280] sm:$0xff]   ;;  %v5117_v39 = vld [vmem:[#allocation7 + $0x288] sm:$0xff]  }
 0x19d   :  { %4658 = vmatpush3.bf16.msra.mxu0 %v5058_v52  ;;  %v5797_v59 = vsel %vm427_vm4, %v411_v23, %v443_v44  ;;  %v5799_v60 = vsel %vm428_vm6, %v412_v34, %v444_v45  ;;  %v398_v7 = vmul.f32 %v5599_v4, %v5621_v8  ;;  %v1717_v11 = vpack.c.bf16 %v5677_v30, %v5687_v42  ;;  %v5063_v4 = vld [vmem:[#allocation7 + $0x128] sm:$0xff]   ;;  %v5064_v52 = vld [vmem:[#allocation7 + $0x30] sm:$0xff]   ;;  %v5124_v30 = vld [vmem:[#allocation7 + $0x2c0] sm:$0xff]  }
 0x19e   :  { %4659 = vmatprep.subr.bf16.mxu0 %v5060_v38  ;;  %v1103_v6 = vpack.c.bf16 %v5799_v60, %v5797_v59  ;;  %v1349_v49 = vrot.slane %v5797_v59, 2  ;;  %v1353_v2 = vrot.slane %v5799_v60, 2  ;;  %v424_v20 = vadd.f32 %v5635_v19, %v402_v57  ;;  %v5067_v57 = vld [vmem:[#allocation7 + $0x138] sm:$0xff]  }
 0x19f   :  { %v5814_v15 = vpack.c.bf16 %v976_v37, %v972_v9  ;;  %v5817_v17 = vpack.c.bf16 %v5424_v31, %v980_v36  ;;  %4718 = vmatpush3.bf16.msra.mxu1 %v5059_v24  ;;  %v2078_v0 = vpack.c.bf16 %v5797_v59, %v5777_v26  ;;  %v420_v8 = vadd.f32 %v5635_v19, %v398_v7  ;;  %v5065_v24 = vld [vmem:[#allocation7 + $0x130] sm:$0xff]   ;;  %v5076_v7 = vld [vmem:[#allocation7 + $0xa0] sm:$0xff]   ;;  %v5149_v59 = vld [vmem:[#allocation7 + $0x388] sm:$0xff]  }
 0x1a0   :  { %v5819_v18 = vpack.c.bf16 %v1353_v2, %v1349_v49  ;;  %vm440_vm9 = vcmp.gt.f32.partialorder %v424_v20, 0.0  ;;  %v456_v21 = vmul.f32 0.2, %v424_v20  ;;  %4719 = vmatprep.subr.bf16.mxu1 %v5061_v58  ;;  %v5826_v9 = vpack.c.bf16 %v5424_v31, %v5799_v60  ;;  %v5090_v60 = vld [vmem:[#allocation7 + $0x1b0] sm:$0xff]   ;;  %v5148_v26 = vld [vmem:[#allocation7 + $0x380] sm:$0xff]  }
 0x1a1   :  { %4660 = vmatpush3.bf16.msra.mxu0 %v5060_v38  ;;  %v2197_v14 = vpack.c.bf16 %v5765_v48, %v5728_v32  ;;  %v5834_v16 = vpack.c.bf16 %v5424_v31, %v5767_v22  ;;  %v5836_v35 = vpack.c.bf16 %v1349_v49, %v1345_v46  ;;  %v5839_v37 = vpack.c.bf16 %v5424_v31, %v1353_v2  ;;  %v5072_v2 = vld [vmem:[#allocation7 + $0x90] sm:$0xff]   ;;  %v5156_v32 = vld [vmem:[#allocation7 + $0x3c0] sm:$0xff]   ;;  %v5157_v48 = vld [vmem:[#allocation7 + $0x3c8] sm:$0xff]  }
 0x1a2   :  { %4661 = vmatprep.subr.bf16.mxu0 %v5062_v63  ;;  %v5830_v5 = vsel %vm440_vm9, %v424_v20, %v456_v21  ;;  %vm436_vm10 = vcmp.gt.f32.partialorder %v420_v8, 0.0  ;;  %v452_v23 = vmul.f32 0.2, %v420_v8  ;;  %v716_v49 = vpack.c.bf16 %v5687_v42, %v5424_v31  ;;  %v5073_v31 = vld [vmem:[#allocation7 + $0x150] sm:$0xff]   ;;  %v5075_v20 = vld [vmem:[#allocation7 + $0x158] sm:$0xff]   ;;  %v5078_v21 = vld [vmem:[#allocation7 + $0xa8] sm:$0xff]  }
 0x1a3   :  { %v1476_v19 = vrot.slane %v5830_v5, 6  ;;  %v1718_v34 = vpack.c.bf16 %v5830_v5, %v5736_v10  ;;  %4720 = vmatpush3.bf16.msra.mxu1 %v5061_v58  ;;  %v5069_v58 = vld [vmem:[#allocation7 + $0x140] sm:$0xff]   ;;  %v5098_v22 = vld [vmem:[#allocation7 + $0x1f0] sm:$0xff]   ;;  %v5125_v42 = vld [vmem:[#allocation7 + $0x2c8] sm:$0xff]  }
 0x1a4   :  { %4721 = vmatprep.subr.bf16.mxu1 %v5063_v4  ;;  %v5848_v38 = vsel %vm436_vm10, %v420_v8, %v452_v23  ;;  %v5082_v8 = vld [vmem:[#allocation7 + $0xb8] sm:$0xff]   ;;  %v5085_v23 = vld [vmem:[#allocation7 + $0x188] sm:$0xff]   ;;  %v5130_v10 = vld [vmem:[#allocation7 + $0x2f0] sm:$0xff]  }
 0x1a5   :  { %4662 = vmatpush3.bf16.msra.mxu0 %v5062_v63  ;;  %v5846_v36 = vpack.c.bf16 %v1476_v19, %v483_v13  ;;  %v1599_v46 = vpack.c.bf16 %v5848_v38, %v5683_v40  ;;  %v1837_v44 = vrot.slane %v5848_v38, 2  ;;  %v5068_v13 = vld [vmem:[#allocation7 + $0x80] sm:$0xff]   ;;  %v5070_v63 = vld [vmem:[#allocation7 + $0x88] sm:$0xff]   ;;  %v5122_v40 = vld [vmem:[#allocation7 + $0x2b0] sm:$0xff]  }
 0x1a6   :  { %4663 = vmatprep.subr.bf16.mxu0 %v5064_v52  ;;  %v5084_v19 = vld [vmem:[#allocation7 + $0x180] sm:$0xff]   ;;  %v5123_v38 = vld [vmem:[#allocation7 + $0x2b8] sm:$0xff]  }
 0x1a7   :  { %4722 = vmatpush3.bf16.msra.mxu1 %v5063_v4  ;;  %v5855_v45 = vpack.c.bf16 %v1837_v44, %v845_v51  ;;  %v5071_v51 = vld [vmem:[#allocation7 + $0x148] sm:$0xff]   ;;  %v5081_v4 = vld [vmem:[#allocation7 + $0x170] sm:$0xff]   ;;  %v5088_v44 = vld [vmem:[#allocation7 + $0x1a0] sm:$0xff]  }
 0x1a8   :  { %4723 = vmatprep.subr.bf16.mxu1 %v5065_v24  ;;  %v5131_v5 = vld [vmem:[#allocation7 + $0x2f8] sm:$0xff]  }
 0x1a9   :  { %4664 = vmatpush3.bf16.msra.mxu0 %v5064_v52  ;;  %v5083_v52 = vld [vmem:[#allocation7 + $0x178] sm:$0xff]  }
 0x1aa   :  { %4665 = vmatprep.subr.bf16.mxu0 %v5066_v41 }
 0x1ab   :  { %4724 = vmatpush3.bf16.msra.mxu1 %v5065_v24  ;;  %v5086_v24 = vld [vmem:[#allocation7 + $0x190] sm:$0xff]  }
 0x1ac   :  { %4725 = vmatprep.subr.bf16.mxu1 %v5067_v57 }
 0x1ad   :  { %4666 = vmatpush3.bf16.msra.mxu0 %v5066_v41  ;;  %v5087_v41 = vld [vmem:[#allocation7 + $0x198] sm:$0xff]  }
 0x1ae   :  { %4671 = vmatprep.subr.bf16.mxu0 %v5068_v13 }
 0x1af   :  { %4726 = vmatpush3.bf16.msra.mxu1 %v5067_v57  ;;  %v5094_v57 = vld [vmem:[#allocation7 + $0x1d0] sm:$0xff]  }
 0x1b0   :  { %4668 = vmatmul.mubr.msk.bf16.vlgmr.msra.gmra.mrb[16].mxu0 %vm5743_vm15, %v5761_v62  ;;  %4731 = vmatprep.subr.bf16.mxu1 %v5069_v58  ;;  %v5074_v62 = vld [vmem:[#allocation7 + $0x98] sm:$0xff]  }
 0x1b1   :  { %4672 = vmatpush3.bf16.msra.mxu0 %v5068_v13  ;;  %4687 = vmatprep.mubr.bf16.mxu0 %v716_v49  ;;  %v5095_v13 = vld [vmem:[#allocation7 + $0x1d8] sm:$0xff]   ;;  %v5101_v49 = vld [vmem:[#allocation7 + $0x208] sm:$0xff]  }
 0x1b2   :  { %4673 = vmatprep.subr.bf16.mxu0 %v5070_v63  ;;  %4728 = vmatmul.mubr.msk.bf16.vlgmr.msra.gmra.mrb[0].mxu1 %vm5743_vm15, %v5785_v43  ;;  %v5077_v43 = vld [vmem:[#allocation7 + $0x160] sm:$0xff]  }
 0x1b3   :  { %4732 = vmatpush3.bf16.msra.mxu1 %v5069_v58  ;;  %4747 = vmatprep.mubr.bf16.mxu1 %v1102_v53  ;;  %v5080_v53 = vld [vmem:[#allocation7 + $0xb0] sm:$0xff]   ;;  %v5096_v58 = vld [vmem:[#allocation7 + $0x1e0] sm:$0xff]  }
 0x1b4   :  { %4733 = vmatprep.subr.bf16.mxu1 %v5071_v51 }
 0x1b5   :  { %4674 = vmatpush3.bf16.msra.mxu0 %v5070_v63  ;;  %v5097_v63 = vld [vmem:[#allocation7 + $0x1e8] sm:$0xff]  }
 0x1b6   :  { %4675 = vmatprep.subr.bf16.mxu0 %v5072_v2 }
 0x1b7   :  { %4734 = vmatpush3.bf16.msra.mxu1 %v5071_v51  ;;  %v5102_v51 = vld [vmem:[#allocation7 + $0x210] sm:$0xff]  }
 0x1b8   :  { %4735 = vmatprep.subr.bf16.mxu1 %v5073_v31 }
 0x1b9   :  { %4676 = vmatpush3.bf16.msra.mxu0 %v5072_v2  ;;  %v5103_v2 = vld [vmem:[#allocation7 + $0x218] sm:$0xff]  }
 0x1ba   :  { %4677 = vmatprep.subr.bf16.mxu0 %v5074_v62 }
 0x1bb   :  { %4736 = vmatpush3.bf16.msra.mxu1 %v5073_v31  ;;  %v5104_v31 = vld [vmem:[#allocation7 + $0x220] sm:$0xff]  }
 0x1bc   :  { %4737 = vmatprep.subr.bf16.mxu1 %v5075_v20 }
 0x1bd   :  { %4678 = vmatpush3.bf16.msra.mxu0 %v5074_v62  ;;  %v5105_v62 = vld [vmem:[#allocation7 + $0x228] sm:$0xff]  }
 0x1be   :  { %4679 = vmatprep.subr.bf16.mxu0 %v5076_v7 }
 0x1bf   :  { %4738 = vmatpush3.bf16.msra.mxu1 %v5075_v20  ;;  %v5106_v20 = vld [vmem:[#allocation7 + $0x230] sm:$0xff]  }
 0x1c0   :  { %4739 = vmatprep.subr.bf16.mxu1 %v5077_v43 }
 0x1c1   :  { %4680 = vmatpush3.bf16.msra.mxu0 %v5076_v7  ;;  %v5109_v7 = vld [vmem:[#allocation7 + $0x248] sm:$0xff]  }
 0x1c2   :  { %4681 = vmatprep.subr.bf16.mxu0 %v5078_v21 }
 0x1c3   :  { %4740 = vmatpush3.bf16.msra.mxu1 %v5077_v43  ;;  %v5110_v43 = vld [vmem:[#allocation7 + $0x250] sm:$0xff]  }
 0x1c4   :  { %4741 = vmatprep.subr.bf16.mxu1 %v5079_v25 }
 0x1c5   :  { %4682 = vmatpush3.bf16.msra.mxu0 %v5078_v21  ;;  %v5111_v21 = vld [vmem:[#allocation7 + $0x258] sm:$0xff]  }
 0x1c6   :  { %4683 = vmatprep.subr.bf16.mxu0 %v5080_v53 }
 0x1c7   :  { %4742 = vmatpush3.bf16.msra.mxu1 %v5079_v25  ;;  %v5112_v25 = vld [vmem:[#allocation7 + $0x260] sm:$0xff]  }
 0x1c8   :  { %4743 = vmatprep.subr.bf16.mxu1 %v5081_v4 }
 0x1c9   :  { %4684 = vmatpush3.bf16.msra.mxu0 %v5080_v53  ;;  %v5113_v53 = vld [vmem:[#allocation7 + $0x268] sm:$0xff]  }
 0x1ca   :  { %4685 = vmatprep.subr.bf16.mxu0 %v5082_v8 }
 0x1cb   :  { %4744 = vmatpush3.bf16.msra.mxu1 %v5081_v4  ;;  %v5114_v4 = vld [vmem:[#allocation7 + $0x270] sm:$0xff]  }
 0x1cc   :  { %4745 = vmatprep.subr.bf16.mxu1 %v5083_v52 }
 0x1cd   :  { %4686 = vmatpush3.bf16.msra.mxu0 %v5082_v8  ;;  %v5119_v8 = vld [vmem:[#allocation7 + $0x298] sm:$0xff]  }
 0x1ce   :  { %4423 = vmatprep.subr.bf16.mxu0 %v5164_v55 }
 0x1cf   :  { %4746 = vmatpush3.bf16.msra.mxu1 %v5083_v52  ;;  %v5120_v52 = vld [vmem:[#allocation7 + $0x2a0] sm:$0xff]  }
 0x1d0   :  { %4688 = vmatmul.mubr.bf16.vlgmr.msra.gmra.mrb[16].mxu0 %v717_v33  ;;  %4751 = vmatprep.subr.bf16.mxu1 %v5084_v19  ;;  %v5089_v33 = vld [vmem:[#allocation7 + $0x1a8] sm:$0xff]  }
 0x1d2   :  { %4748 = vmatmul.mubr.bf16.vlgmr.msra.gmra.mrb[0].mxu1 %v1103_v6  ;;  %v5091_v6 = vld [vmem:[#allocation7 + $0x1b8] sm:$0xff]  }
 0x1d3   :  { %4752 = vmatpush3.bf16.msra.mxu1 %v5084_v19  ;;  %4767 = vmatprep.mubr.bf16.mxu1 %v1221_v29  ;;  %v5093_v29 = vld [vmem:[#allocation7 + $0x1c8] sm:$0xff]  }
 0x1d4   :  { %4753 = vmatprep.subr.bf16.mxu1 %v5085_v23  ;;  %v5121_v19 = vld [vmem:[#allocation7 + $0x2a8] sm:$0xff]  }
 0x1d7   :  { %4754 = vmatpush3.bf16.msra.mxu1 %v5085_v23  ;;  %v5128_v23 = vld [vmem:[#allocation7 + $0x2e0] sm:$0xff]  }
 0x1d8   :  { %4755 = vmatprep.subr.bf16.mxu1 %v5086_v24 }
 0x1db   :  { %4756 = vmatpush3.bf16.msra.mxu1 %v5086_v24  ;;  %v5129_v24 = vld [vmem:[#allocation7 + $0x2e8] sm:$0xff]  }
 0x1dc   :  { %4757 = vmatprep.subr.bf16.mxu1 %v5087_v41 }
 0x1df   :  { %4758 = vmatpush3.bf16.msra.mxu1 %v5087_v41  ;;  %v5134_v41 = vld [vmem:[#allocation7 + $0x310] sm:$0xff]  }
 0x1e0   :  { %4759 = vmatprep.subr.bf16.mxu1 %v5088_v44 }
 0x1e3   :  { %4760 = vmatpush3.bf16.msra.mxu1 %v5088_v44  ;;  %v5135_v44 = vld [vmem:[#allocation7 + $0x318] sm:$0xff]  }
 0x1e4   :  { %4761 = vmatprep.subr.bf16.mxu1 %v5089_v33 }
 0x1e7   :  { %4762 = vmatpush3.bf16.msra.mxu1 %v5089_v33  ;;  %v5136_v33 = vld [vmem:[#allocation7 + $0x320] sm:$0xff]  }
 0x1e8   :  { %4763 = vmatprep.subr.bf16.mxu1 %v5090_v60 }
 0x1eb   :  { %4764 = vmatpush3.bf16.msra.mxu1 %v5090_v60  ;;  %v5137_v60 = vld [vmem:[#allocation7 + $0x328] sm:$0xff]  }
 0x1ec   :  { %4765 = vmatprep.subr.bf16.mxu1 %v5091_v6 }
 0x1ef   :  { %4766 = vmatpush3.bf16.msra.mxu1 %v5091_v6 }
 0x1f0   :  { %4771 = vmatprep.subr.bf16.mxu1 %v5092_v3 }
 0x1f2   :  { %4768 = vmatmul.mubr.bf16.vlgmr.msra.gmra.mrb[0].mxu1 %v1222_v47  ;;  %v5099_v47 = vld [vmem:[#allocation7 + $0x1f8] sm:$0xff]  }
 0x1f3   :  { %4772 = vmatpush3.bf16.msra.mxu1 %v5092_v3  ;;  %4787 = vmatprep.mubr.msk.bf16.mxu1 %vm5709_vm13, %v5789_v50  ;;  %v5100_v50 = vld [vmem:[#allocation7 + $0x200] sm:$0xff]  }
 0x1f4   :  { %4773 = vmatprep.subr.bf16.mxu1 %v5093_v29 }
 0x1f7   :  { %4774 = vmatpush3.bf16.msra.mxu1 %v5093_v29  ;;  %v5139_v29 = vld [vmem:[#allocation7 + $0x338] sm:$0xff]  }
 0x1f8   :  { %4775 = vmatprep.subr.bf16.mxu1 %v5094_v57 }
 0x1fb   :  { %4776 = vmatpush3.bf16.msra.mxu1 %v5094_v57  ;;  %v5140_v57 = vld [vmem:[#allocation7 + $0x340] sm:$0xff]  }
 0x1fc   :  { %4777 = vmatprep.subr.bf16.mxu1 %v5095_v13 }
 0x1ff   :  { %4778 = vmatpush3.bf16.msra.mxu1 %v5095_v13  ;;  %v5141_v13 = vld [vmem:[#allocation7 + $0x348] sm:$0xff]  }
 0x200   :  { %4779 = vmatprep.subr.bf16.mxu1 %v5096_v58 }
 0x203   :  { %4780 = vmatpush3.bf16.msra.mxu1 %v5096_v58  ;;  %v5142_v58 = vld [vmem:[#allocation7 + $0x350] sm:$0xff]  }
 0x204   :  { %4781 = vmatprep.subr.bf16.mxu1 %v5097_v63 }
 0x207   :  { %4782 = vmatpush3.bf16.msra.mxu1 %v5097_v63  ;;  %v5143_v63 = vld [vmem:[#allocation7 + $0x358] sm:$0xff]  }
 0x208   :  { %4783 = vmatprep.subr.bf16.mxu1 %v5098_v22 }
 0x20b   :  { %4784 = vmatpush3.bf16.msra.mxu1 %v5098_v22  ;;  %v5144_v22 = vld [vmem:[#allocation7 + $0x360] sm:$0xff]  }
 0x20c   :  { %4785 = vmatprep.subr.bf16.mxu1 %v5099_v47 }
 0x20f   :  { %4786 = vmatpush3.bf16.msra.mxu1 %v5099_v47  ;;  %v5146_v47 = vld [vmem:[#allocation7 + $0x370] sm:$0xff]  }
 0x210   :  { %4791 = vmatprep.subr.bf16.mxu1 %v5100_v50 }
 0x212   :  { %4788 = vmatmul.mubr.msk.bf16.vlgmr.msra.gmra.mrb[0].mxu1 %vm5709_vm13, %v5819_v18  ;;  %v5107_v18 = vld [vmem:[#allocation7 + $0x238] sm:$0xff]  }
 0x213   :  { %4792 = vmatpush3.bf16.msra.mxu1 %v5100_v50  ;;  %4807 = vmatprep.mubr.msk.bf16.mxu1 %vm5743_vm15, %v5793_v54  ;;  %v5108_v54 = vld [vmem:[#allocation7 + $0x240] sm:$0xff]   ;;  %v5151_v50 = vld [vmem:[#allocation7 + $0x398] sm:$0xff]  }
 0x214   :  { %4793 = vmatprep.subr.bf16.mxu1 %v5101_v49 }
 0x217   :  { %4794 = vmatpush3.bf16.msra.mxu1 %v5101_v49  ;;  %v5152_v49 = vld [vmem:[#allocation7 + $0x3a0] sm:$0xff]  }
 0x218   :  { %4795 = vmatprep.subr.bf16.mxu1 %v5102_v51 }
 0x21b   :  { %4796 = vmatpush3.bf16.msra.mxu1 %v5102_v51  ;;  %v5153_v51 = vld [vmem:[#allocation7 + $0x3a8] sm:$0xff]  }
 0x21c   :  { %4797 = vmatprep.subr.bf16.mxu1 %v5103_v2 }
 0x21f   :  { %4798 = vmatpush3.bf16.msra.mxu1 %v5103_v2  ;;  %v5154_v2 = vld [vmem:[#allocation7 + $0x3b0] sm:$0xff]  }
 0x220   :  { %4799 = vmatprep.subr.bf16.mxu1 %v5104_v31 }
 0x223   :  { %4800 = vmatpush3.bf16.msra.mxu1 %v5104_v31  ;;  %v5159_v31 = vld [vmem:[#allocation7 + $0x3d8] sm:$0xff]  }
 0x224   :  { %4801 = vmatprep.subr.bf16.mxu1 %v5105_v62 }
 0x227   :  { %4802 = vmatpush3.bf16.msra.mxu1 %v5105_v62  ;;  %v5160_v62 = vld [vmem:[#allocation7 + $0x3e0] sm:$0xff]  }
 0x228   :  { %4803 = vmatprep.subr.bf16.mxu1 %v5106_v20 }
 0x22b   :  { %4804 = vmatpush3.bf16.msra.mxu1 %v5106_v20  ;;  %v5161_v20 = vld [vmem:[#allocation7 + $0x3e8] sm:$0xff]  }
 0x22c   :  { %4805 = vmatprep.subr.bf16.mxu1 %v5107_v18 }
 0x22f   :  { %4806 = vmatpush3.bf16.msra.mxu1 %v5107_v18  ;;  %v5162_v18 = vld [vmem:[#allocation7 + $0x3f0] sm:$0xff]  }
 0x230   :  { %4811 = vmatprep.subr.bf16.mxu1 %v5108_v54 }
 0x232   :  { %4808 = vmatmul.mubr.msk.bf16.vlgmr.msra.gmra.mrb[0].mxu1 %vm5743_vm15, %v5846_v36  ;;  %v5115_v36 = vld [vmem:[#allocation7 + $0x278] sm:$0xff]  }
 0x233   :  { %4812 = vmatpush3.bf16.msra.mxu1 %v5108_v54  ;;  %4827 = vmatprep.mubr.bf16.mxu1 %v1598_v61  ;;  %v5118_v61 = vld [vmem:[#allocation7 + $0x290] sm:$0xff]   ;;  %v5166_v54 = vld [vmem:[#allocation8 + $0x48] sm:$0xff]  }
 0x234   :  { %4813 = vmatprep.subr.bf16.mxu1 %v5109_v7 }
 0x237   :  { %4814 = vmatpush3.bf16.msra.mxu1 %v5109_v7  ;;  %v5167_v7 = vld [vmem:[#allocation8 + $0x8] sm:$0xff]  }
 0x238   :  { %4815 = vmatprep.subr.bf16.mxu1 %v5110_v43 }
 0x23b   :  { %4816 = vmatpush3.bf16.msra.mxu1 %v5110_v43  ;;  %v5168_v43 = vld [vmem:[#allocation8 + $0x50] sm:$0xff]  }
 0x23c   :  { %4817 = vmatprep.subr.bf16.mxu1 %v5111_v21 }
 0x23f   :  { %4818 = vmatpush3.bf16.msra.mxu1 %v5111_v21  ;;  %v5169_v21 = vld [vmem:[#allocation8 + $0x10] sm:$0xff]  }
 0x240   :  { %4819 = vmatprep.subr.bf16.mxu1 %v5112_v25 }
 0x243   :  { %4820 = vmatpush3.bf16.msra.mxu1 %v5112_v25  ;;  %v5170_v25 = vld [vmem:[#allocation8 + $0x58] sm:$0xff]  }
 0x244   :  { %4821 = vmatprep.subr.bf16.mxu1 %v5113_v53 }
 0x247   :  { %4822 = vmatpush3.bf16.msra.mxu1 %v5113_v53  ;;  %v5171_v53 = vld [vmem:[#allocation8 + $0x18] sm:$0xff]  }
 0x248   :  { %4823 = vmatprep.subr.bf16.mxu1 %v5114_v4 }
 0x24b   :  { %4824 = vmatpush3.bf16.msra.mxu1 %v5114_v4  ;;  %v5172_v4 = vld [vmem:[#allocation8 + $0x60] sm:$0xff]  }
 0x24c   :  { %4825 = vmatprep.subr.bf16.mxu1 %v5115_v36 }
 0x24f   :  { %4826 = vmatpush3.bf16.msra.mxu1 %v5115_v36  ;;  %v5173_v36 = vld [vmem:[#allocation8 + $0x20] sm:$0xff]  }
 0x250   :  { %4831 = vmatprep.subr.bf16.mxu1 %v5116_v28 }
 0x252   :  { %4828 = vmatmul.mubr.bf16.vlgmr.msra.gmra.mrb[0].mxu1 %v1599_v46  ;;  %v5127_v46 = vld [vmem:[#allocation7 + $0x2d8] sm:$0xff]  }
 0x253   :  { %4832 = vmatpush3.bf16.msra.mxu1 %v5116_v28  ;;  %4847 = vmatprep.mubr.bf16.mxu1 %v1717_v11  ;;  %v5126_v11 = vld [vmem:[#allocation7 + $0x2d0] sm:$0xff]   ;;  %v5175_v28 = vld [vmem:[#allocation8 + $0x28] sm:$0xff]  }
 0x254   :  { %4833 = vmatprep.subr.bf16.mxu1 %v5117_v39 }
 0x257   :  { %4834 = vmatpush3.bf16.msra.mxu1 %v5117_v39  ;;  %v5176_v39 = vld [vmem:[#allocation8 + $0x70] sm:$0xff]  }
 0x258   :  { %4835 = vmatprep.subr.bf16.mxu1 %v5118_v61 }
 0x25b   :  { %4836 = vmatpush3.bf16.msra.mxu1 %v5118_v61  ;;  %v5177_v61 = vld [vmem:[#allocation8 + $0x30] sm:$0xff]  }
 0x25c   :  { %4837 = vmatprep.subr.bf16.mxu1 %v5119_v8 }
 0x25f   :  { %4838 = vmatpush3.bf16.msra.mxu1 %v5119_v8  ;;  %v5178_v8 = vld [vmem:[#allocation8 + $0x78] sm:$0xff]  }
 0x260   :  { %4839 = vmatprep.subr.bf16.mxu1 %v5120_v52 }
 0x263   :  { %4840 = vmatpush3.bf16.msra.mxu1 %v5120_v52  ;;  %v5179_v52 = vld [vmem:[#allocation8 + $0x38] sm:$0xff]  }
 0x264   :  { %4841 = vmatprep.subr.bf16.mxu1 %v5121_v19 }
 0x267   :  { %4842 = vmatpush3.bf16.msra.mxu1 %v5121_v19  ;;  %v5180_v19 = vld [vmem:[#allocation8 + $0xc0] sm:$0xff]  }
 0x268   :  { %4843 = vmatprep.subr.bf16.mxu1 %v5122_v40 }
 0x26b   :  { %4844 = vmatpush3.bf16.msra.mxu1 %v5122_v40 }
 0x26c   :  { %4845 = vmatprep.subr.bf16.mxu1 %v5123_v38 }
 0x26f   :  { %4846 = vmatpush3.bf16.msra.mxu1 %v5123_v38 }
 0x270   :  { %4851 = vmatprep.subr.bf16.mxu1 %v5124_v30 }
 0x272   :  { %4848 = vmatmul.mubr.bf16.vlgmr.msra.gmra.mrb[0].mxu1 %v1718_v34  ;;  %v5133_v34 = vld [vmem:[#allocation7 + $0x308] sm:$0xff]  }
 0x273   :  { %4852 = vmatpush3.bf16.msra.mxu1 %v5124_v30  ;;  %4867 = vmatprep.mubr.msk.bf16.mxu1 %vm5709_vm13, %v5713_v56  ;;  %v5132_v56 = vld [vmem:[#allocation7 + $0x300] sm:$0xff]  }
 0x274   :  { %4853 = vmatprep.subr.bf16.mxu1 %v5125_v42 }
 0x277   :  { %4854 = vmatpush3.bf16.msra.mxu1 %v5125_v42 }
 0x278   :  { %4855 = vmatprep.subr.bf16.mxu1 %v5126_v11 }
 0x27b   :  { %4856 = vmatpush3.bf16.msra.mxu1 %v5126_v11 }
 0x27c   :  { %4857 = vmatprep.subr.bf16.mxu1 %v5127_v46 }
 0x27f   :  { %4858 = vmatpush3.bf16.msra.mxu1 %v5127_v46 }
 0x280   :  { %4859 = vmatprep.subr.bf16.mxu1 %v5128_v23 }
 0x283   :  { %4860 = vmatpush3.bf16.msra.mxu1 %v5128_v23 }
 0x284   :  { %4861 = vmatprep.subr.bf16.mxu1 %v5129_v24 }
 0x287   :  { %4862 = vmatpush3.bf16.msra.mxu1 %v5129_v24 }
 0x288   :  { %4863 = vmatprep.subr.bf16.mxu1 %v5130_v10 }
 0x28b   :  { %4864 = vmatpush3.bf16.msra.mxu1 %v5130_v10 }
 0x28c   :  { %4865 = vmatprep.subr.bf16.mxu1 %v5131_v5 }
 0x28f   :  { %4866 = vmatpush3.bf16.msra.mxu1 %v5131_v5 }
 0x290   :  { %4871 = vmatprep.subr.bf16.mxu1 %v5132_v56 }
 0x292   :  { %4868 = vmatmul.mubr.msk.bf16.vlgmr.msra.gmra.mrb[0].mxu1 %vm5709_vm13, %v5855_v45 }
 0x293   :  { %4872 = vmatpush3.bf16.msra.mxu1 %v5132_v56  ;;  %4887 = vmatprep.mubr.msk.bf16.mxu1 %vm5743_vm15, %v5814_v15 }
 0x294   :  { %4873 = vmatprep.subr.bf16.mxu1 %v5133_v34 }
 0x297   :  { %4874 = vmatpush3.bf16.msra.mxu1 %v5133_v34 }
 0x298   :  { %4875 = vmatprep.subr.bf16.mxu1 %v5134_v41 }
 0x29b   :  { %4876 = vmatpush3.bf16.msra.mxu1 %v5134_v41 }
 0x29c   :  { %4877 = vmatprep.subr.bf16.mxu1 %v5135_v44 }
 0x29f   :  { %4878 = vmatpush3.bf16.msra.mxu1 %v5135_v44 }
 0x2a0   :  { %4879 = vmatprep.subr.bf16.mxu1 %v5136_v33 }
 0x2a3   :  { %v5913_v6 = vpop.f32.mrb[16].mxu0  ;;  %4880 = vmatpush3.bf16.msra.mxu1 %v5136_v33 }
 0x2a4   :  { %v5915_v45 = vpop.f32.mrb[17].mxu0  ;;  %4881 = vmatprep.subr.bf16.mxu1 %v5137_v60 }
 0x2a5   :  { %v5917_v3 = vpop.f32.mrb[18].mxu0 }
 0x2a6   :  { %v5919_v15 = vpop.f32.mrb[19].mxu0 }
 0x2a7   :  { %4882 = vmatpush3.bf16.msra.mxu1 %v5137_v60 }
 0x2a8   :  { %4883 = vmatprep.subr.bf16.mxu1 %v5138_v12 }
 0x2ab   :  { %4884 = vmatpush3.bf16.msra.mxu1 %v5138_v12 }
 0x2ac   :  { %4885 = vmatprep.subr.bf16.mxu1 %v5139_v29 }
 0x2af   :  { %4886 = vmatpush3.bf16.msra.mxu1 %v5139_v29 }
 0x2b0   :  { %4891 = vmatprep.subr.bf16.mxu1 %v5140_v57 }
 0x2b2   :  { %4888 = vmatmul.mubr.msk.bf16.vlgmr.msra.gmra.mrb[0].mxu1 %vm4086_vm11, %v5817_v17  ;;  %v5147_v17 = vld [vmem:[#allocation7 + $0x378] sm:$0xff]  }
 0x2b3   :  { %4892 = vmatpush3.bf16.msra.mxu1 %v5140_v57  ;;  %4907 = vmatprep.mubr.bf16.mxu1 %v2078_v0  ;;  %v5150_v0 = vld [vmem:[#allocation7 + $0x390] sm:$0xff]  }
 0x2b4   :  { %4893 = vmatprep.subr.bf16.mxu1 %v5141_v13 }
 0x2b7   :  { %4894 = vmatpush3.bf16.msra.mxu1 %v5141_v13 }
 0x2b8   :  { %4895 = vmatprep.subr.bf16.mxu1 %v5142_v58 }
 0x2bb   :  { %4896 = vmatpush3.bf16.msra.mxu1 %v5142_v58 }
 0x2bc   :  { %4897 = vmatprep.subr.bf16.mxu1 %v5143_v63 }
 0x2bf   :  { %4898 = vmatpush3.bf16.msra.mxu1 %v5143_v63 }
 0x2c0   :  { %4899 = vmatprep.subr.bf16.mxu1 %v5144_v22 }
 0x2c3   :  { %4900 = vmatpush3.bf16.msra.mxu1 %v5144_v22 }
 0x2c4   :  { %4901 = vmatprep.subr.bf16.mxu1 %v5145_v27 }
 0x2c7   :  { %4902 = vmatpush3.bf16.msra.mxu1 %v5145_v27 }
 0x2c8   :  { %4903 = vmatprep.subr.bf16.mxu1 %v5146_v47 }
 0x2cb   :  { %4904 = vmatpush3.bf16.msra.mxu1 %v5146_v47 }
 0x2cc   :  { %4905 = vmatprep.subr.bf16.mxu1 %v5147_v17 }
 0x2cf   :  { %4906 = vmatpush3.bf16.msra.mxu1 %v5147_v17 }
 0x2d0   :  { %4911 = vmatprep.subr.bf16.mxu1 %v5148_v26 }
 0x2d2   :  { %4908 = vmatmul.mubr.bf16.vlgmr.msra.gmra.mrb[0].mxu1 %v5826_v9  ;;  %v5155_v9 = vld [vmem:[#allocation7 + $0x3b8] sm:$0xff]  }
 0x2d3   :  { %4912 = vmatpush3.bf16.msra.mxu1 %v5148_v26  ;;  %4927 = vmatprep.mubr.bf16.mxu1 %v2197_v14  ;;  %v5158_v14 = vld [vmem:[#allocation7 + $0x3d0] sm:$0xff]  }
 0x2d4   :  { %4913 = vmatprep.subr.bf16.mxu1 %v5149_v59 }
 0x2d7   :  { %4914 = vmatpush3.bf16.msra.mxu1 %v5149_v59 }
 0x2d8   :  { %4915 = vmatprep.subr.bf16.mxu1 %v5150_v0 }
 0x2db   :  { %4916 = vmatpush3.bf16.msra.mxu1 %v5150_v0 }
 0x2dc   :  { %4917 = vmatprep.subr.bf16.mxu1 %v5151_v50 }
 0x2df   :  { %4918 = vmatpush3.bf16.msra.mxu1 %v5151_v50 }
 0x2e0   :  { %4919 = vmatprep.subr.bf16.mxu1 %v5152_v49 }
 0x2e3   :  { %4920 = vmatpush3.bf16.msra.mxu1 %v5152_v49 }
 0x2e4   :  { %4921 = vmatprep.subr.bf16.mxu1 %v5153_v51 }
 0x2e7   :  { %4922 = vmatpush3.bf16.msra.mxu1 %v5153_v51 }
 0x2e8   :  { %4923 = vmatprep.subr.bf16.mxu1 %v5154_v2 }
 0x2eb   :  { %4924 = vmatpush3.bf16.msra.mxu1 %v5154_v2  ;;  %v2435_v2 = vld [vmem:[%s6000_s6] sm:$0x1]  ;;  %s5426_s6 = smov [#allocation10]  }
 0x2ec   :  { %4925 = vmatprep.subr.bf16.mxu1 %v5155_v9 }
 0x2ef   :  { %4926 = vmatpush3.bf16.msra.mxu1 %v5155_v9 }
 0x2f0   :  { %4931 = vmatprep.subr.bf16.mxu1 %v5156_v32 }
 0x2f2   :  { %4928 = vmatmul.mubr.bf16.vlgmr.msra.gmra.mrb[0].mxu1 %v5834_v16  ;;  %v5163_v16 = vld [vmem:[#allocation7 + $0x3f8] sm:$0xff]  }
 0x2f3   :  { %4932 = vmatpush3.bf16.msra.mxu1 %v5156_v32  ;;  %4947 = vmatprep.mubr.msk.bf16.mxu1 %vm5709_vm13, %v5836_v35  ;;  %v5165_v35 = vld [vmem:[#allocation8] sm:$0xff]  }
 0x2f4   :  { %4933 = vmatprep.subr.bf16.mxu1 %v5157_v48  ;;  %4424 = vmatpush3.bf16.msra.mxu0 %v5165_v35 }
 0x2f5   :  { %4425 = vmatprep.subr.bf16.mxu0 %v5166_v54 }
 0x2f7   :  { %4934 = vmatpush3.bf16.msra.mxu1 %v5157_v48  ;;  %v2436_v48 = vld [vmem:[%s6001_s7] sm:$0x1]  ;;  %s3902_s7 = sshll.u32 %s5426_s6, 4  ;;  %s3903_s7 = int_to_ptr.vmem [resolvable:$true] %s3902_s7 }
 0x2f8   :  { %4935 = vmatprep.subr.bf16.mxu1 %v5158_v14  ;;  %4426 = vmatpush3.bf16.msra.mxu0 %v5167_v7  ;;  %s5388_s13 = scalar_lea.vmem %s3903_s7, 32  ;;  %p5393_p5 = scmp.lt.s32.totalorder %s3903_s7, %s3903_s7 }
 0x2f9   :  { %4427 = vmatprep.subr.bf16.mxu0 %v5168_v43  ;;  %p5389_p4 = scmp.ne.s32.totalorder %s3903_s7, %s5388_s13  ;;  %p5394_p6 = scmp.lt.s32.totalorder %s5388_s13, %s5388_s13 }
 0x2fb   :  { %4936 = vmatpush3.bf16.msra.mxu1 %v5158_v14  ;;  %p5395_p7 = por %p5394_p6, %p5393_p5 }
 0x2fc   :  { %4937 = vmatprep.subr.bf16.mxu1 %v5159_v31  ;;  %4428 = vmatpush3.bf16.msra.mxu0 %v5169_v21 }
 0x2fd   :  { %4429 = vmatprep.subr.bf16.mxu0 %v5170_v25  ;;  %p5396_p8 = pnand %p5395_p7, %p5389_p4 }
 0x2ff   :  { %4938 = vmatpush3.bf16.msra.mxu1 %v5159_v31 }
 0x300   :  { %4939 = vmatprep.subr.bf16.mxu1 %v5160_v62  ;;  %4430 = vmatpush3.bf16.msra.mxu0 %v5171_v53 }
 0x301   :  { %4431 = vmatprep.subr.bf16.mxu0 %v5172_v4 }
 0x303   :  { %4940 = vmatpush3.bf16.msra.mxu1 %v5160_v62 }
 0x304   :  { %4941 = vmatprep.subr.bf16.mxu1 %v5161_v20  ;;  %4432 = vmatpush3.bf16.msra.mxu0 %v5173_v36 }
 0x307   :  { %4942 = vmatpush3.bf16.msra.mxu1 %v5161_v20 }
 0x308   :  { %4943 = vmatprep.subr.bf16.mxu1 %v5162_v18 }
 0x30b   :  { %4944 = vmatpush3.bf16.msra.mxu1 %v5162_v18 }
 0x30c   :  { %4945 = vmatprep.subr.bf16.mxu1 %v5163_v16 }
 0x30f   :  { %4946 = vmatpush3.bf16.msra.mxu1 %v5163_v16 }
 0x312   :  { %4948 = vmatmul.mubr.msk.bf16.vlgmr.msra.gmra.mrb[0].mxu1 %vm4116_vm5, %v5839_v37  ;;  %v5174_v37 = vld [vmem:[#allocation8 + $0x68] sm:$0xff]  }
 0x313   :  { %4433 = vmatprep.subr.bf16.mxu0 %v5174_v37 }
 0x314   :  { %4434 = vmatpush3.bf16.msra.mxu0 %v5175_v28  ;;  %v5181_v28 = vld [vmem:[#allocation8 + $0x80] sm:$0xff]  }
 0x315   :  { %4435 = vmatprep.subr.bf16.mxu0 %v5176_v39 }
 0x318   :  { %4436 = vmatpush3.bf16.msra.mxu0 %v5177_v61  ;;  %v5182_v61 = vld [vmem:[#allocation8 + $0xc8] sm:$0xff]  }
 0x319   :  { %4437 = vmatprep.subr.bf16.mxu0 %v5178_v8 }
 0x31c   :  { %4438 = vmatpush3.bf16.msra.mxu0 %v5179_v52  ;;  %v5184_v52 = vld [vmem:[#allocation8 + $0xd0] sm:$0xff]  }
 0x31d   :  { %4445 = vmatprep.subr.bf16.mxu0 %v5180_v19  ;;  %v5185_v19 = vld [vmem:[#allocation8 + $0x90] sm:$0xff]  }
 0x3e5   :  { %v4949_v40 = vpop.f32.mrb[0].mxu1 }
 0x3e6   :  { %v4951_v38 = vadd.f32 %v4949_v40, %v5913_v6  ;;  %v2416_v30 = vpop.f32.mrb[1].mxu1  ;;  %v5186_v40 = vld [vmem:[#allocation8 + $0xd8] sm:$0xff]  }
 0x3e7   :  { %v4952_v42 = vadd.f32 %v2416_v30, %v5915_v45  ;;  %v4950_v11 = vpop.f32.mrb[2].mxu1  ;;  %v5188_v30 = vld [vmem:[#allocation8 + $0xe0] sm:$0xff]  }
 0x3e8   :  { %v4953_v46 = vadd.f32 %v4950_v11, %v5917_v3  ;;  %v2419_v23 = vpop.f32.mrb[3].mxu1  ;;  %v2448_v34 = vmul.f32 %v4951_v38, %v4951_v38  ;;  %v5190_v11 = vld [vmem:[#allocation8 + $0xe8] sm:$0xff]  }
 0x3e9   :  { %v4954_v24 = vadd.f32 %v2419_v23, %v5919_v15  ;;  %v2446_v10 = vmul.f32 %v4952_v42, %v4952_v42  ;;  %v5192_v23 = vld [vmem:[#allocation8 + $0xf0] sm:$0xff]  }
 0x3ea   :  { %v2449_v33 = vmul.f32 %v4953_v46, %v4953_v46 }
 0x3eb   :  { %v2437_v5 = vadd.f32 %v4954_v24, %v4952_v42  ;;  %v2447_v56 = vmul.f32 %v4954_v24, %v4954_v24 }
 0x3ed   :  { %v2438_v41 = vadd.f32 %v4951_v38, %v2437_v5  ;;  %v2450_v44 = vadd.f32 %v2447_v56, %v2446_v10  ;;  %v5193_v10 = vld [vmem:[#allocation8 + $0xb0] sm:$0xff]   ;;  %v5194_v5 = vld [vmem:[#allocation8 + $0xf8] sm:$0xff]  }
 0x3ef   :  { %v2439_v60 = vadd.f32 %v4953_v46, %v2438_v41  ;;  %v2451_v12 = vadd.f32 %v2450_v44, %v2448_v34  ;;  %v5195_v34 = vld [vmem:[#allocation8 + $0xb8] sm:$0xff]   ;;  %v5196_v44 = vld [vmem:[#allocation8 + $0x140] sm:$0xff]  }
 0x3f1   :  { %v2440_v29 = vrot.slane %v2439_v60, 4  ;;  %v2452_v6 = vadd.f32 %v2451_v12, %v2449_v33 }
 0x3f3   :  { %v2441_v57 = vadd.f32 %v2440_v29, %v2439_v60  ;;  %v2453_v13 = vrot.slane %v2452_v6, 4  ;;  %v5197_v60 = vld [vmem:[#allocation8 + $0x100] sm:$0xff]   ;;  %v5198_v29 = vld [vmem:[#allocation8 + $0x148] sm:$0xff]  }
 0x3f5   :  { %v2442_v45 = vrot.slane %v2441_v57, 2  ;;  %v2454_v58 = vadd.f32 %v2453_v13, %v2452_v6  ;;  %v5200_v13 = vld [vmem:[#allocation8 + $0x150] sm:$0xff]  }
 0x3f7   :  { %v2443_v63 = vadd.f32 %v2442_v45, %v2441_v57  ;;  %v2455_v3 = vrot.slane %v2454_v58, 2  ;;  %v5199_v57 = vld [vmem:[#allocation8 + $0x108] sm:$0xff]   ;;  %v5201_v45 = vld [vmem:[#allocation8 + $0x110] sm:$0xff]  }
 0x3f9   :  { %v2444_v22 = vrot.slane %v2443_v63, 1  ;;  %v2456_v27 = vadd.f32 %v2455_v3, %v2454_v58  ;;  %v5202_v58 = vld [vmem:[#allocation8 + $0x158] sm:$0xff]   ;;  %v5204_v3 = vld [vmem:[#allocation8 + $0x160] sm:$0xff]  }
 0x3fb   :  { %v2445_v15 = vadd.f32 %v2444_v22, %v2443_v63  ;;  %v2457_v47 = vrot.slane %v2456_v27, 1  ;;  %v5203_v63 = vld [vmem:[#allocation8 + $0x118] sm:$0xff]   ;;  %v5205_v22 = vld [vmem:[#allocation8 + $0x120] sm:$0xff]  }
 0x3fd   :  { %v2458_v17 = vadd.f32 %v2457_v47, %v2456_v27  ;;  %v2459_v26 = vmul.f32 0.03125, %v2445_v15  ;;  %v5206_v27 = vld [vmem:[#allocation8 + $0x168] sm:$0xff]   ;;  %v5208_v47 = vld [vmem:[#allocation8 + $0x170] sm:$0xff]  }
 0x3fe   :  { %v5207_v15 = vld [vmem:[#allocation8 + $0x128] sm:$0xff]  }
 0x3ff   :  { %v2460_v59 = vmul.f32 0.03125, %v2458_v17  ;;  %v2461_v0 = vmul.f32 %v2459_v26, %v2459_v26  ;;  %v5209_v17 = vld [vmem:[#allocation8 + $0x130] sm:$0xff]  }
 0x401   :  { %v2462_v50 = vsub.f32 %v2460_v59, %v2461_v0  ;;  %v5211_v59 = vld [vmem:[#allocation8 + $0x138] sm:$0xff]   ;;  %v5212_v0 = vld [vmem:[#allocation8 + $0x1c0] sm:$0xff]  }
 0x403   :  { %v2463_v49 = vmax.f32 %v2462_v50, 0.0 }
 0x405   :  { %v2464_v51 = vadd.f32 1e-05, %v2463_v49  ;;  %v5213_v49 = vld [vmem:[#allocation8 + $0x180] sm:$0xff]  }
 0x407   :  { %5294 = vrsqrt.f32 %v2464_v51 }
 0x411   :  { %v5295_v9 = vpop.eup %5294 }
 0x412   :  { %v2466_v32 = vmul.f32 %v5295_v9, %v2435_v2  ;;  %v5214_v2 = vld [vmem:[#allocation8 + $0x1c8] sm:$0xff]  }
 0x414   :  { %v2467_v14 = vmul.f32 %v2466_v32, %v2459_v26  ;;  %v2473_v31 = vrot.slane %v2466_v32, %v5615_v1  ;;  %v5210_v26 = vld [vmem:[#allocation8 + $0x178] sm:$0xff]   ;;  %v5215_v32 = vld [vmem:[#allocation8 + $0x188] sm:$0xff]  }
 0x416   :  { %v2468_v62 = vsub.f32 %v2436_v48, %v2467_v14  ;;  %v2476_v20 = vmul.f32 %v4954_v24, %v2473_v31  ;;  %v2475_v18 = vmul.f32 %v4952_v42, %v2473_v31  ;;  %v2477_v16 = vmul.f32 %v4951_v38, %v2473_v31  ;;  %v5187_v38 = vld [vmem:[#allocation8 + $0x98] sm:$0xff]   ;;  %v5189_v42 = vld [vmem:[#allocation8 + $0xa0] sm:$0xff]   ;;  %v5216_v48 = vld [vmem:[#allocation8 + $0x1d0] sm:$0xff]  }
 0x417   :  { %v2478_v55 = vmul.f32 %v4953_v46, %v2473_v31  ;;  %v5191_v46 = vld [vmem:[#allocation8 + $0xa8] sm:$0xff]   ;;  %v5217_v14 = vld [vmem:[#allocation8 + $0x190] sm:$0xff]   ;;  %v5218_v31 = vld [vmem:[#allocation8 + $0x1d8] sm:$0xff]  }
 0x418   :  { %v2483_v35 = vrot.slane %v2468_v62, %v5615_v1  ;;  %v5183_v1 = vld [vmem:[#allocation8 + $0x88] sm:$0xff]   ;;  %v5219_v62 = vld [vmem:[#allocation8 + $0x198] sm:$0xff]  }
 0x41a   :  { %v2486_v54 = vadd.f32 %v2483_v35, %v2476_v20  ;;  %v2485_v7 = vadd.f32 %v2483_v35, %v2475_v18  ;;  %v5951_v43 = vadd.f32 %v2483_v35, %v2477_v16  ;;  %v5953_v21 = vadd.f32 %v2483_v35, %v2478_v55  ;;  %v5220_v20 = vld [vmem:[#allocation8 + $0x1e0] sm:$0xff]   ;;  %v5222_v16 = vld [vmem:[#allocation8 + $0x1e8] sm:$0xff]   ;;  %v5224_v35 = vld [vmem:[#allocation8 + $0x1f0] sm:$0xff]  }
 0x41b   :  { %v5221_v18 = vld [vmem:[#allocation8 + $0x1a0] sm:$0xff]   ;;  %v5223_v55 = vld [vmem:[#allocation8 + $0x1a8] sm:$0xff]  }
 0x41c   :  { %vm2489_vm7 = vcmp.gt.f32.partialorder %v2485_v7, 0.0  ;;  %v2493_v25 = vmul.f32 0.2, %v2485_v7  ;;  %v2494_v24 = vmul.f32 0.2, %v2486_v54  ;;  %vm2490_vm8 = vcmp.gt.f32.partialorder %v2486_v54, 0.0 }
 0x41d   :  { %vm2491_vm12 = vcmp.gt.f32.partialorder %v5951_v43, 0.0  ;;  %vm2492_vm13 = vcmp.gt.f32.partialorder %v5953_v21, 0.0 }
 0x41e   :  { %v2497_v53 = vsel %vm2489_vm7, %v2485_v7, %v2493_v25  ;;  %v5955_v56 = vsel %vm2490_vm8, %v2486_v54, %v2494_v24  ;;  %v2495_v54 = vmul.f32 0.2, %v5951_v43  ;;  %v5225_v7 = vld [vmem:[#allocation8 + $0x1b0] sm:$0xff]   ;;  %v5226_v25 = vld [vmem:[#allocation8 + $0x1f8] sm:$0xff]  }
 0x41f   :  { %v2502_v4 = vrot.slane %v2497_v53, 2  ;;  %v2506_v36 = vrot.slane %v2497_v53, 6  ;;  %v2529_v39 = vpack.c.bf16 %v2497_v53, %v2497_v53  ;;  %v2504_v41 = vrot.slane %v2497_v53, 4  ;;  %v5241_v24 = vld [vmem:[#allocation8 + $0x230] sm:$0xff]  }
 0x420   :  { %v2509_v33 = vrot.slane %v5955_v56, 2  ;;  %v2513_v50 = vrot.slane %v5955_v56, 6  ;;  %v2533_v51 = vpack.c.bf16 %v5955_v56, %v5955_v56  ;;  %v5964_v53 = vsel %vm2491_vm12, %v5951_v43, %v2495_v54  ;;  %v5232_v43 = vld [vmem:[#allocation8 + $0x250] sm:$0xff]   ;;  %v5274_v54 = vld [vmem:[#allocation8 + $0x378] sm:$0xff]  }
 0x421   :  { %v2530_v37 = vpack.c.bf16 %v2502_v4, %v2502_v4  ;;  %v2532_v8 = vpack.c.bf16 %v2506_v36, %v2506_v36  ;;  %v2531_v12 = vpack.c.bf16 %v2504_v41, %v2504_v41  ;;  %v5227_v4 = vld [vmem:[#allocation8 + $0x1b8] sm:$0xff]   ;;  %v2511_v36 = vrot.slane %v5955_v56, 4  ;;  %v5244_v56 = vld [vmem:[#allocation8 + $0x2c0] sm:$0xff]  }
 0x422   :  { %v2534_v6 = vpack.c.bf16 %v2509_v33, %v2509_v33  ;;  %v2536_v9 = vpack.c.bf16 %v2513_v50, %v2513_v50  ;;  %v5245_v41 = vld [vmem:[#allocation8 + $0x280] sm:$0xff]   ;;  %v5246_v33 = vld [vmem:[#allocation8 + $0x2c8] sm:$0xff]  }
 0x423   :  { %3601 = vmatprep.mubr.bf16.mxu0 %v2530_v37  ;;  %v5228_v37 = vld [vmem:[#allocation8 + $0x240] sm:$0xff]  }
 0x424   :  { %3602 = vmatmul.mubr.bf16.vlgmr.msra.gmra.mrb[20].mxu0 %v2529_v39  ;;  %v5229_v39 = vld [vmem:[#allocation8 + $0x200] sm:$0xff]  }
 0x425   :  { %4446 = vmatpush3.bf16.msra.mxu0 %v5181_v28  ;;  %3641 = vmatprep.mubr.bf16.mxu0 %v2532_v8  ;;  %v2516_v28 = vrot.slane %v5964_v53, 2  ;;  %v5230_v8 = vld [vmem:[#allocation8 + $0x248] sm:$0xff]  }
 0x426   :  { %4447 = vmatprep.subr.bf16.mxu0 %v5182_v61  ;;  %v2535_v61 = vpack.c.bf16 %v2511_v36, %v2511_v36 }
 0x429   :  { %4448 = vmatpush3.bf16.msra.mxu0 %v5183_v1  ;;  %v2538_v1 = vpack.c.bf16 %v2516_v28, %v2516_v28 }
 0x42a   :  { %4449 = vmatprep.subr.bf16.mxu0 %v5184_v52  ;;  %v5231_v52 = vld [vmem:[#allocation8 + $0x208] sm:$0xff]  }
 0x42d   :  { %4450 = vmatpush3.bf16.msra.mxu0 %v5185_v19  ;;  %v5233_v19 = vld [vmem:[#allocation8 + $0x210] sm:$0xff]  }
 0x42e   :  { %4451 = vmatprep.subr.bf16.mxu0 %v5186_v40  ;;  %v5234_v40 = vld [vmem:[#allocation8 + $0x258] sm:$0xff]  }
 0x431   :  { %4452 = vmatpush3.bf16.msra.mxu0 %v5187_v38  ;;  %v5235_v38 = vld [vmem:[#allocation8 + $0x218] sm:$0xff]  }
 0x432   :  { %4453 = vmatprep.subr.bf16.mxu0 %v5188_v30  ;;  %v5236_v30 = vld [vmem:[#allocation8 + $0x260] sm:$0xff]  }
 0x435   :  { %4454 = vmatpush3.bf16.msra.mxu0 %v5189_v42  ;;  %v5237_v42 = vld [vmem:[#allocation8 + $0x220] sm:$0xff]  }
 0x436   :  { %4455 = vmatprep.subr.bf16.mxu0 %v5190_v11  ;;  %v5238_v11 = vld [vmem:[#allocation8 + $0x268] sm:$0xff]  }
 0x439   :  { %4456 = vmatpush3.bf16.msra.mxu0 %v5191_v46  ;;  %v5239_v46 = vld [vmem:[#allocation8 + $0x228] sm:$0xff]  }
 0x43a   :  { %4457 = vmatprep.subr.bf16.mxu0 %v5192_v23  ;;  %v5240_v23 = vld [vmem:[#allocation8 + $0x270] sm:$0xff]  }
 0x43d   :  { %4458 = vmatpush3.bf16.msra.mxu0 %v5193_v10  ;;  %v5242_v10 = vld [vmem:[#allocation8 + $0x278] sm:$0xff]  }
 0x43e   :  { %4459 = vmatprep.subr.bf16.mxu0 %v5194_v5  ;;  %v5243_v5 = vld [vmem:[#allocation8 + $0x238] sm:$0xff]  }
 0x441   :  { %4460 = vmatpush3.bf16.msra.mxu0 %v5195_v34  ;;  %v2520_v34 = vrot.slane %v5964_v53, 6 }
 0x442   :  { %4467 = vmatprep.subr.bf16.mxu0 %v5196_v44  ;;  %v2537_v44 = vpack.c.bf16 %v5964_v53, %v5964_v53 }
 0x444   :  { %3642 = vmatmul.mubr.bf16.vlgmr.msra.gmra.mrb[24].mxu0 %v2531_v12  ;;  %v5247_v12 = vld [vmem:[#allocation8 + $0x288] sm:$0xff]  }
 0x445   :  { %4468 = vmatpush3.bf16.msra.mxu0 %v5197_v60  ;;  %3681 = vmatprep.mubr.bf16.mxu0 %v2534_v6  ;;  %v2540_v60 = vpack.c.bf16 %v2520_v34, %v2520_v34  ;;  %v5249_v6 = vld [vmem:[#allocation8 + $0x290] sm:$0xff]  }
 0x446   :  { %4469 = vmatprep.subr.bf16.mxu0 %v5198_v29  ;;  %v5248_v29 = vld [vmem:[#allocation8 + $0x2d0] sm:$0xff]  }
 0x449   :  { %4470 = vmatpush3.bf16.msra.mxu0 %v5199_v57  ;;  %v5250_v57 = vld [vmem:[#allocation8 + $0x2d8] sm:$0xff]  }
 0x44a   :  { %4471 = vmatprep.subr.bf16.mxu0 %v5200_v13  ;;  %v5251_v13 = vld [vmem:[#allocation8 + $0x298] sm:$0xff]  }
 0x44d   :  { %4472 = vmatpush3.bf16.msra.mxu0 %v5201_v45  ;;  %v5252_v45 = vld [vmem:[#allocation8 + $0x2e0] sm:$0xff]  }
 0x44e   :  { %4473 = vmatprep.subr.bf16.mxu0 %v5202_v58  ;;  %v5253_v58 = vld [vmem:[#allocation8 + $0x2a0] sm:$0xff]  }
 0x451   :  { %4474 = vmatpush3.bf16.msra.mxu0 %v5203_v63  ;;  %v5254_v63 = vld [vmem:[#allocation8 + $0x2e8] sm:$0xff]  }
 0x452   :  { %4475 = vmatprep.subr.bf16.mxu0 %v5204_v3  ;;  %v5255_v3 = vld [vmem:[#allocation8 + $0x2a8] sm:$0xff]  }
 0x455   :  { %4476 = vmatpush3.bf16.msra.mxu0 %v5205_v22  ;;  %v5256_v22 = vld [vmem:[#allocation8 + $0x2f0] sm:$0xff]  }
 0x456   :  { %4477 = vmatprep.subr.bf16.mxu0 %v5206_v27  ;;  %v2496_v27 = vmul.f32 0.2, %v5953_v21 }
 0x459   :  { %4478 = vmatpush3.bf16.msra.mxu0 %v5207_v15  ;;  %v5257_v15 = vld [vmem:[#allocation8 + $0x2b0] sm:$0xff]  }
 0x45a   :  { %4479 = vmatprep.subr.bf16.mxu0 %v5208_v47  ;;  %v5258_v47 = vld [vmem:[#allocation8 + $0x2f8] sm:$0xff]  }
 0x45d   :  { %4480 = vmatpush3.bf16.msra.mxu0 %v5209_v17  ;;  %v5974_v17 = vsel %vm2492_vm13, %v5953_v21, %v2496_v27  ;;  %v5264_v21 = vld [vmem:[#allocation8 + $0x350] sm:$0xff]  }
 0x45e   :  { %4481 = vmatprep.subr.bf16.mxu0 %v5210_v26  ;;  %v5259_v26 = vld [vmem:[#allocation8 + $0x2b8] sm:$0xff]   ;;  %v2523_v50 = vrot.slane %v5974_v17, 2  ;;  %v2541_v36 = vpack.c.bf16 %v5974_v17, %v5974_v17  ;;  %v2525_v34 = vrot.slane %v5974_v17, 4 }
 0x461   :  { %4482 = vmatpush3.bf16.msra.mxu0 %v5211_v59  ;;  %v2518_v59 = vrot.slane %v5964_v53, 4  ;;  %v2527_v53 = vrot.slane %v5974_v17, 6 }
 0x462   :  { %4489 = vmatprep.subr.bf16.mxu0 %v5212_v0  ;;  %v5260_v0 = vld [vmem:[#allocation8 + $0x340] sm:$0xff]  }
 0x463   :  { %v2544_v28 = vpack.c.bf16 %v2527_v53, %v2527_v53 }
 0x464   :  { %3682 = vmatmul.mubr.bf16.vlgmr.msra.gmra.mrb[28].mxu0 %v2533_v51  ;;  %v2539_v51 = vpack.c.bf16 %v2518_v59, %v2518_v59 }
 0x465   :  { %4490 = vmatpush3.bf16.msra.mxu0 %v5213_v49  ;;  %3721 = vmatprep.mubr.bf16.mxu0 %v2536_v9  ;;  %v5261_v49 = vld [vmem:[#allocation8 + $0x300] sm:$0xff]   ;;  %v2542_v9 = vpack.c.bf16 %v2523_v50, %v2523_v50 }
 0x466   :  { %4491 = vmatprep.subr.bf16.mxu0 %v5214_v2  ;;  %v5262_v2 = vld [vmem:[#allocation8 + $0x348] sm:$0xff]  }
 0x469   :  { %4492 = vmatpush3.bf16.msra.mxu0 %v5215_v32  ;;  %v5263_v32 = vld [vmem:[#allocation8 + $0x308] sm:$0xff]  }
 0x46a   :  { %4493 = vmatprep.subr.bf16.mxu0 %v5216_v48  ;;  %v5265_v48 = vld [vmem:[#allocation8 + $0x310] sm:$0xff]  }
 0x46d   :  { %4494 = vmatpush3.bf16.msra.mxu0 %v5217_v14  ;;  %v5266_v14 = vld [vmem:[#allocation8 + $0x358] sm:$0xff]  }
 0x46e   :  { %4495 = vmatprep.subr.bf16.mxu0 %v5218_v31  ;;  %v5267_v31 = vld [vmem:[#allocation8 + $0x318] sm:$0xff]  }
 0x471   :  { %4496 = vmatpush3.bf16.msra.mxu0 %v5219_v62  ;;  %v5268_v62 = vld [vmem:[#allocation8 + $0x360] sm:$0xff]  }
 0x472   :  { %4497 = vmatprep.subr.bf16.mxu0 %v5220_v20  ;;  %v5269_v20 = vld [vmem:[#allocation8 + $0x320] sm:$0xff]  }
 0x475   :  { %4498 = vmatpush3.bf16.msra.mxu0 %v5221_v18  ;;  %v5270_v18 = vld [vmem:[#allocation8 + $0x368] sm:$0xff]  }
 0x476   :  { %4499 = vmatprep.subr.bf16.mxu0 %v5222_v16  ;;  %v5271_v16 = vld [vmem:[#allocation8 + $0x328] sm:$0xff]  }
 0x479   :  { %4500 = vmatpush3.bf16.msra.mxu0 %v5223_v55  ;;  %v5272_v55 = vld [vmem:[#allocation8 + $0x370] sm:$0xff]  }
 0x47a   :  { %4501 = vmatprep.subr.bf16.mxu0 %v5224_v35  ;;  %v5273_v35 = vld [vmem:[#allocation8 + $0x330] sm:$0xff]  }
 0x47d   :  { %4502 = vmatpush3.bf16.msra.mxu0 %v5225_v7  ;;  %v5275_v7 = vld [vmem:[#allocation8 + $0x338] sm:$0xff]  }
 0x47e   :  { %4503 = vmatprep.subr.bf16.mxu0 %v5226_v25  ;;  %v5276_v25 = vld [vmem:[#allocation8 + $0x3c0] sm:$0xff]  }
 0x481   :  { %4504 = vmatpush3.bf16.msra.mxu0 %v5227_v4  ;;  %v5277_v4 = vld [vmem:[#allocation8 + $0x380] sm:$0xff]  }
 0x482   :  { %4511 = vmatprep.subr.bf16.mxu0 %v5228_v37  ;;  %v5278_v37 = vld [vmem:[#allocation8 + $0x3c8] sm:$0xff]  }
 0x484   :  { %3722 = vmatmul.mubr.bf16.vlgmr.msra.gmra.mrb[32].mxu0 %v2535_v61  ;;  %v5280_v61 = vld [vmem:[#allocation8 + $0x3d0] sm:$0xff]  }
 0x485   :  { %4512 = vmatpush3.bf16.msra.mxu0 %v5229_v39  ;;  %3761 = vmatprep.mubr.bf16.mxu0 %v2538_v1  ;;  %v5279_v39 = vld [vmem:[#allocation8 + $0x388] sm:$0xff]   ;;  %v5282_v1 = vld [vmem:[#allocation8 + $0x3d8] sm:$0xff]  }
 0x486   :  { %4513 = vmatprep.subr.bf16.mxu0 %v5230_v8  ;;  %v5281_v8 = vld [vmem:[#allocation8 + $0x390] sm:$0xff]  }
 0x489   :  { %4514 = vmatpush3.bf16.msra.mxu0 %v5231_v52  ;;  %v5283_v52 = vld [vmem:[#allocation8 + $0x398] sm:$0xff]  }
 0x48a   :  { %4515 = vmatprep.subr.bf16.mxu0 %v5232_v43  ;;  %v5284_v43 = vld [vmem:[#allocation8 + $0x3e0] sm:$0xff]  }
 0x48d   :  { %4516 = vmatpush3.bf16.msra.mxu0 %v5233_v19  ;;  %v5285_v19 = vld [vmem:[#allocation8 + $0x3a0] sm:$0xff]  }
 0x48e   :  { %4517 = vmatprep.subr.bf16.mxu0 %v5234_v40  ;;  %v5286_v40 = vld [vmem:[#allocation8 + $0x3e8] sm:$0xff]  }
 0x491   :  { %4518 = vmatpush3.bf16.msra.mxu0 %v5235_v38  ;;  %v5287_v38 = vld [vmem:[#allocation8 + $0x3a8] sm:$0xff]  }
 0x492   :  { %4519 = vmatprep.subr.bf16.mxu0 %v5236_v30  ;;  %v5288_v30 = vld [vmem:[#allocation8 + $0x3f0] sm:$0xff]  }
 0x495   :  { %4520 = vmatpush3.bf16.msra.mxu0 %v5237_v42 }
 0x496   :  { %4521 = vmatprep.subr.bf16.mxu0 %v5238_v11 }
 0x499   :  { %4522 = vmatpush3.bf16.msra.mxu0 %v5239_v46 }
 0x49a   :  { %4523 = vmatprep.subr.bf16.mxu0 %v5240_v23 }
 0x49d   :  { %4524 = vmatpush3.bf16.msra.mxu0 %v5241_v24  ;;  %v5289_v24 = vld [vmem:[#allocation8 + $0x3b0] sm:$0xff]  }
 0x49e   :  { %4525 = vmatprep.subr.bf16.mxu0 %v5242_v10 }
 0x4a1   :  { %4526 = vmatpush3.bf16.msra.mxu0 %v5243_v5  ;;  %v5290_v5 = vld [vmem:[#allocation8 + $0x3f8] sm:$0xff]  }
 0x4a2   :  { %4533 = vmatprep.subr.bf16.mxu0 %v5244_v56  ;;  %v5291_v56 = vld [vmem:[#allocation8 + $0x3b8] sm:$0xff]  }
 0x4a4   :  { %3762 = vmatmul.mubr.bf16.vlgmr.msra.gmra.mrb[36].mxu0 %v2537_v44 }
 0x4a5   :  { %4534 = vmatpush3.bf16.msra.mxu0 %v5245_v41  ;;  %3801 = vmatprep.mubr.bf16.mxu0 %v2540_v60  ;;  %v2543_v41 = vpack.c.bf16 %v2525_v34, %v2525_v34 }
 0x4a6   :  { %4535 = vmatprep.subr.bf16.mxu0 %v5246_v33 }
 0x4a9   :  { %4536 = vmatpush3.bf16.msra.mxu0 %v5247_v12 }
 0x4aa   :  { %4537 = vmatprep.subr.bf16.mxu0 %v5248_v29 }
 0x4ad   :  { %4538 = vmatpush3.bf16.msra.mxu0 %v5249_v6 }
 0x4ae   :  { %4539 = vmatprep.subr.bf16.mxu0 %v5250_v57 }
 0x4b1   :  { %4540 = vmatpush3.bf16.msra.mxu0 %v5251_v13 }
 0x4b2   :  { %4541 = vmatprep.subr.bf16.mxu0 %v5252_v45 }
 0x4b5   :  { %4542 = vmatpush3.bf16.msra.mxu0 %v5253_v58 }
 0x4b6   :  { %4543 = vmatprep.subr.bf16.mxu0 %v5254_v63 }
 0x4b9   :  { %4544 = vmatpush3.bf16.msra.mxu0 %v5255_v3 }
 0x4ba   :  { %4545 = vmatprep.subr.bf16.mxu0 %v5256_v22 }
 0x4bd   :  { %4546 = vmatpush3.bf16.msra.mxu0 %v5257_v15 }
 0x4be   :  { %4547 = vmatprep.subr.bf16.mxu0 %v5258_v47 }
 0x4c1   :  { %4548 = vmatpush3.bf16.msra.mxu0 %v5259_v26 }
 0x4c2   :  { %4555 = vmatprep.subr.bf16.mxu0 %v5260_v0 }
 0x4c4   :  { %3802 = vmatmul.mubr.bf16.vlgmr.msra.gmra.mrb[40].mxu0 %v2539_v51 }
 0x4c5   :  { %4556 = vmatpush3.bf16.msra.mxu0 %v5261_v49  ;;  %3841 = vmatprep.mubr.bf16.mxu0 %v2542_v9 }
 0x4c6   :  { %4557 = vmatprep.subr.bf16.mxu0 %v5262_v2 }
 0x4c9   :  { %4558 = vmatpush3.bf16.msra.mxu0 %v5263_v32 }
 0x4ca   :  { %4559 = vmatprep.subr.bf16.mxu0 %v5264_v21 }
 0x4cd   :  { %4560 = vmatpush3.bf16.msra.mxu0 %v5265_v48 }
 0x4ce   :  { %4561 = vmatprep.subr.bf16.mxu0 %v5266_v14 }
 0x4d1   :  { %4562 = vmatpush3.bf16.msra.mxu0 %v5267_v31 }
 0x4d2   :  { %4563 = vmatprep.subr.bf16.mxu0 %v5268_v62 }
 0x4d5   :  { %4564 = vmatpush3.bf16.msra.mxu0 %v5269_v20 }
 0x4d6   :  { %4565 = vmatprep.subr.bf16.mxu0 %v5270_v18 }
 0x4d9   :  { %4566 = vmatpush3.bf16.msra.mxu0 %v5271_v16 }
 0x4da   :  { %4567 = vmatprep.subr.bf16.mxu0 %v5272_v55 }
 0x4dd   :  { %4568 = vmatpush3.bf16.msra.mxu0 %v5273_v35 }
 0x4de   :  { %4569 = vmatprep.subr.bf16.mxu0 %v5274_v54 }
 0x4e1   :  { %4570 = vmatpush3.bf16.msra.mxu0 %v5275_v7 }
 0x4e2   :  { %4577 = vmatprep.subr.bf16.mxu0 %v5276_v25 }
 0x4e4   :  { %3842 = vmatmul.mubr.bf16.vlgmr.msra.gmra.mrb[44].mxu0 %v2541_v36 }
 0x4e5   :  { %4578 = vmatpush3.bf16.msra.mxu0 %v5277_v4  ;;  %3881 = vmatprep.mubr.bf16.mxu0 %v2544_v28 }
 0x4e6   :  { %4579 = vmatprep.subr.bf16.mxu0 %v5278_v37 }
 0x4e9   :  { %4580 = vmatpush3.bf16.msra.mxu0 %v5279_v39 }
 0x4ea   :  { %4581 = vmatprep.subr.bf16.mxu0 %v5280_v61 }
 0x4ed   :  { %4582 = vmatpush3.bf16.msra.mxu0 %v5281_v8 }
 0x4ee   :  { %4583 = vmatprep.subr.bf16.mxu0 %v5282_v1 }
 0x4f1   :  { %4584 = vmatpush3.bf16.msra.mxu0 %v5283_v52 }
 0x4f2   :  { %4585 = vmatprep.subr.bf16.mxu0 %v5284_v43 }
 0x4f5   :  { %4586 = vmatpush3.bf16.msra.mxu0 %v5285_v19 }
 0x4f6   :  { %4587 = vmatprep.subr.bf16.mxu0 %v5286_v40 }
 0x4f7   :  { %v4439_v42 = vpop.f32.mrb[20].mxu0 }
 0x4f8   :  { %v4440_v11 = vpop.f32.mrb[21].mxu0 }
 0x4f9   :  { %v4441_v46 = vadd.f32 %v4440_v11, %v4439_v42  ;;  %4588 = vmatpush3.bf16.msra.mxu0 %v5287_v38  ;;  %v4442_v23 = vpop.f32.mrb[22].mxu0 }
 0x4fa   :  { %v4443_v10 = vpop.f32.mrb[23].mxu0  ;;  %4589 = vmatprep.subr.bf16.mxu0 %v5288_v30 }
 0x4fd   :  { %4590 = vmatpush3.bf16.msra.mxu0 %v5289_v24 }
 0x4fe   :  { %4591 = vmatprep.subr.bf16.mxu0 %v5290_v5 }
 0x501   :  { %4592 = vmatpush3.bf16.msra.mxu0 %v5291_v56 }
 0x504   :  { %3882 = vmatmul.mubr.bf16.vlgmr.msra.gmra.mrb[48].mxu0 %v2543_v41 }
 0x517   :  { %v4461_v44 = vpop.f32.mrb[24].mxu0 }
 0x518   :  { %v4462_v33 = vpop.f32.mrb[25].mxu0 }
 0x519   :  { %v4463_v60 = vadd.f32 %v4462_v33, %v4461_v44  ;;  %v4464_v12 = vpop.f32.mrb[26].mxu0 }
 0x51a   :  { %v4465_v29 = vpop.f32.mrb[27].mxu0 }
 0x51b   :  { %v3644_v6 = vadd.f32 %v4463_v60, %v4441_v46 }
 0x537   :  { %v4483_v57 = vpop.f32.mrb[28].mxu0 }
 0x538   :  { %v4484_v13 = vpop.f32.mrb[29].mxu0 }
 0x539   :  { %v4485_v45 = vadd.f32 %v4484_v13, %v4483_v57  ;;  %v4486_v58 = vpop.f32.mrb[30].mxu0 }
 0x53a   :  { %v4487_v63 = vpop.f32.mrb[31].mxu0 }
 0x53b   :  { %v3684_v3 = vadd.f32 %v4485_v45, %v3644_v6 }
 0x557   :  { %v4505_v22 = vpop.f32.mrb[32].mxu0 }
 0x558   :  { %v4506_v27 = vpop.f32.mrb[33].mxu0 }
 0x559   :  { %v4507_v15 = vadd.f32 %v4506_v27, %v4505_v22  ;;  %v4508_v47 = vpop.f32.mrb[34].mxu0 }
 0x55a   :  { %v4509_v17 = vpop.f32.mrb[35].mxu0 }
 0x55b   :  { %v3724_v26 = vadd.f32 %v4507_v15, %v3684_v3 }
 0x577   :  { %v4527_v59 = vpop.f32.mrb[36].mxu0 }
 0x578   :  { %v4528_v0 = vpop.f32.mrb[37].mxu0 }
 0x579   :  { %v4529_v50 = vadd.f32 %v4528_v0, %v4527_v59  ;;  %v4530_v49 = vpop.f32.mrb[38].mxu0 }
 0x57a   :  { %v4531_v51 = vpop.f32.mrb[39].mxu0 }
 0x57b   :  { %v3764_v2 = vadd.f32 %v4529_v50, %v3724_v26 }
 0x597   :  { %v4549_v9 = vpop.f32.mrb[40].mxu0 }
 0x598   :  { %v4550_v32 = vpop.f32.mrb[41].mxu0 }
 0x599   :  { %v4551_v21 = vadd.f32 %v4550_v32, %v4549_v9  ;;  %v4552_v48 = vpop.f32.mrb[42].mxu0 }
 0x59a   :  { %v4553_v14 = vpop.f32.mrb[43].mxu0 }
 0x59b   :  { %v3804_v31 = vadd.f32 %v4551_v21, %v3764_v2 }
 0x5b7   :  { %v4571_v62 = vpop.f32.mrb[44].mxu0 }
 0x5b8   :  { %v4572_v20 = vpop.f32.mrb[45].mxu0 }
 0x5b9   :  { %v4573_v18 = vadd.f32 %v4572_v20, %v4571_v62  ;;  %v4574_v16 = vpop.f32.mrb[46].mxu0 }
 0x5ba   :  { %v4575_v55 = vpop.f32.mrb[47].mxu0 }
 0x5bb   :  { %v3844_v35 = vadd.f32 %v4573_v18, %v3804_v31 }
 0x5d7   :  { %v4593_v54 = vpop.f32.mrb[48].mxu0 }
 0x5d8   :  { %v4594_v7 = vpop.f32.mrb[49].mxu0 }
 0x5d9   :  { %v4595_v25 = vadd.f32 %v4594_v7, %v4593_v54  ;;  %v4596_v53 = vpop.f32.mrb[50].mxu0 }
 0x5da   :  { %v4597_v4 = vpop.f32.mrb[51].mxu0 }
 0x5db   :  { %v3884_v36 = vadd.f32 %v4595_v25, %v3844_v35 }
 0x5dd   :  { %v3889_v37 = vsub.f32 0.0, %v3884_v36 }
 0x5df   :  { %v3890_v28 = vmul.f32 1.442695, %v3889_v37 }
 0x5e1   :  { %5296 = vpow2.f32 %v3890_v28 }
 0x5eb   :  { %v5297_v39 = vpop.eup %5296 }
 0x5ec   :  { %v3892_v61 = vadd.f32 1.0, %v5297_v39 }
 0x5ee   :  { %5298 = vrcp.f32 %v3892_v61 }
 0x5f8   :  { %v5299_v8 = vpop.eup %5298 }
 0x5f9   :  { %3895 = vst [vmem:[#allocation10] sm:$0x3] %v5299_v8 }
 0x5fa   :  { %5399 = shalt.err (!%p5396_p8)
}
 0x5fb   :  { %s5400_s16 = scalar_lea.hbm %s6002_s8, 32 }
 0x5fc   :  { %p5401_p9 = scmp.ne.s32.totalorder %s6002_s8, %s5400_s16  ;;  %p5404_p10 = scmp.lt.u32.totalorder %s5400_s16, %s6002_s8 }
 0x5fe   :  { %p5406_p11 = pnand %p5404_p10, %p5401_p9 }
 0x600   :  { %5409 = shalt.err (!%p5406_p11)
}
 0x601   :  { %3905 = dma.vmem_to_hbm [thread:$0]  %s3903_s7, 32, %s6002_s8, [#allocation4]  }
 0x602   :  { %5416 = dma.done.wait [#allocation4], 32  }
 0x603   :  { %5417 = vsyncadd [#allocation4], 4294967264 }
 0x604   :  { %3909 = vsyncpa [#allocation3], 1 }
 0x605   :  { %3910 = vsyncpa [#allocation6], 1 }
 0x606   :  { %3911 = vsyncpa [#allocation9], 1 }
 0x607   :  { %3912 = vsyncpa [#allocation4], 1 }

</bundles_post_ra>
